<compile_context>
chip_gen: v6e
topology: v6e:2x2x1
jax: 0.10.0
libtpu: 0.0.40
codegen_flags: <defaults>
</compile_context>

<pallas_src>
import jax
import jax.numpy as jnp
from jax import lax
from jax.experimental import pallas as pl
from jax.experimental.pallas import tpu as pltpu


def _make_kernel(KH, KW, H, W, HO, WO, CIN, COUT, padding, dilation):
    def kernel(x_ref, wf_ref, o_ref, xp_ref):
        # x_ref  : (1, CIN, H, W)        one batch element, NCHW
        # wf_ref : (COUT, KH*KW*CIN)     fused depthwise*pointwise weights
        # o_ref  : (1, COUT, HO*WO)      lane-dense flattened output
        # xp_ref : (CIN, Hp, Wp)         VMEM scratch: spatially padded input
        if padding > 0:
            # Zero the border then drop the image into the interior.
            # (Re-done every step so "parallel" grid semantics stay safe.)
            xp_ref[...] = jnp.zeros_like(xp_ref)
            xp_ref[:, padding:padding + H, padding:padding + W] = x_ref[0]

            def tap(h0, w0):
                return xp_ref[:, h0:h0 + HO, w0:w0 + WO]
        else:
            def tap(h0, w0):
                return x_ref[0, :, h0:h0 + HO, w0:w0 + WO]

        # im2col: one contiguous (CIN, HO, WO) window per depthwise tap, sliced
        # straight from the (padded) ref in the input dtype (no upcast here).
        taps = []
        for kh in range(KH):
            for kw in range(KW):
                taps.append(tap(kh * dilation, kw * dilation))
        patches = jnp.concatenate(taps, axis=0)              # (KH*KW*CIN, HO, WO)
        patches = patches.reshape(KH * KW * CIN, HO * WO)    # lane-dense M

        # Single MXU contraction with K = KH*KW*CIN, accumulated in f32.
        out = jnp.dot(wf_ref[...], patches,
                      preferred_element_type=jnp.float32)    # (COUT, HO*WO)
        o_ref[0] = out.astype(o_ref.dtype)                   # unmasked, lane-dense store

    return kernel


def separable_conv2d(x_nchw, w_dw, w_pw, *, stride=1, padding=0, dilation=1):
    """SeparableConv2d forward. x_nchw: (B, Cin, H, W) -> (B, Cout, HO, WO)."""
    B, CIN, H, W = x_nchw.shape
    CIN_w, one, KH, KW = w_dw.shape
    assert CIN_w == CIN and one == 1
    COUT = w_pw.shape[0]

    # Dense (stride-1) output extents; stride is applied by subsampling below.
    HO1 = H + 2 * padding - dilation * (KH - 1)
    WO1 = W + 2 * padding - dilation * (KW - 1)
    assert HO1 >= 1 and WO1 >= 1
    Hp, Wp = H + 2 * padding, W + 2 * padding

    # Fold depthwise into pointwise:
    #   Wf[cout, (kh*KW + kw)*CIN + c] = w_pw[cout, c] * w_dw[c, kh, kw]
    wdw = w_dw[:, 0, :, :].astype(jnp.float32)               # (CIN, KH, KW)
    wpw = w_pw[:, :, 0, 0].astype(jnp.float32)               # (COUT, CIN)
    wf = wpw[:, None, None, :] * jnp.transpose(wdw, (1, 2, 0))[None]
    wf = wf.reshape(COUT, KH * KW * CIN).astype(x_nchw.dtype)

    kernel = _make_kernel(KH, KW, H, W, HO1, WO1, CIN, COUT, padding, dilation)

    out_flat = pl.pallas_call(
        kernel,
        out_shape=jax.ShapeDtypeStruct((B, COUT, HO1 * WO1), x_nchw.dtype),
        grid_spec=pltpu.PrefetchScalarGridSpec(
            num_scalar_prefetch=0,
            grid=(B,),
            in_specs=[
                pl.BlockSpec((1, CIN, H, W), lambda b: (b, 0, 0, 0)),
                pl.BlockSpec((COUT, KH * KW * CIN), lambda b: (0, 0)),
            ],
            out_specs=pl.BlockSpec((1, COUT, HO1 * WO1), lambda b: (b, 0, 0)),
            scratch_shapes=[pltpu.VMEM((CIN, Hp, Wp), x_nchw.dtype)],
        ),
        compiler_params=pltpu.CompilerParams(
            dimension_semantics=("parallel",)),
    )(x_nchw, wf)

    # Free metadata-only reshape back to NCHW spatial layout.
    out = out_flat.reshape(B, COUT, HO1, WO1)
    if stride > 1:
        out = out[:, :, ::stride, ::stride]
    return out


def _reference(x_nchw, w_dw, w_pw, *, stride, padding, dilation):
    """Pure-JAX reference (lax conv) for correctness checking."""
    CIN = x_nchw.shape[1]
    dw = lax.conv_general_dilated(
        x_nchw, w_dw, window_strides=(stride, stride),
        padding=((padding, padding), (padding, padding)),
        rhs_dilation=(dilation, dilation),
        dimension_numbers=("NCHW", "OIHW", "NCHW"),
        feature_group_count=CIN)
    pw = lax.conv_general_dilated(
        dw, w_pw, window_strides=(1, 1), padding=((0, 0), (0, 0)),
        dimension_numbers=("NCHW", "OIHW", "NCHW"))
    return pw


if __name__ == "__main__":
    # SeparableConv2d(in_channels=4, out_channels=8, kernel_size=3,
    #                 stride=1, padding=1, dilation=1, bias=False)
    B, CIN, H, W = 2, 4, 16, 16
    COUT, K, STRIDE, PAD, DIL = 8, 3, 1, 1, 1

    key = jax.random.PRNGKey(0)
    kx, kd, kp = jax.random.split(key, 3)
    x = jax.random.normal(kx, (B, CIN, H, W), dtype=jnp.float32)
    w_depthwise = 0.1 * jax.random.normal(kd, (CIN, 1, K, K), dtype=jnp.float32)
    w_pointwise = 0.1 * jax.random.normal(kp, (COUT, CIN, 1, 1), dtype=jnp.float32)

    out = separable_conv2d(x, w_depthwise, w_pointwise,
                           stride=STRIDE, padding=PAD, dilation=DIL)
    out = jax.block_until_ready(out)

    ref = _reference(x, w_depthwise, w_pointwise,
                     stride=STRIDE, padding=PAD, dilation=DIL)
    assert out.shape == (B, COUT, H, W), out.shape
    assert jnp.allclose(out, ref, atol=1e-5, rtol=1e-5), "mismatch vs reference"

    print("KERNEL_OK")
</pallas_src>

<mosaic_0001>
module attributes {stable_mosaic.version = 11 : i64} {
  func.func @kernel(%arg0: i32, %arg1: memref<1x4x16x16xf32, #tpu.memory_space<vmem>>, %arg2: memref<8x36xf32, #tpu.memory_space<vmem>>, %arg3: memref<1x8x256xf32, #tpu.memory_space<vmem>>, %arg4: memref<4x18x18xf32, #tpu.memory_space<vmem>>) attributes {dimension_semantics = [#tpu.dimension_semantics<parallel>], iteration_bounds = array<i64: 2>, scalar_prefetch = 0 : i64, scratch_operands = 1 : i64, tpu.core_type = #tpu.core_type<tc>, window_params = [{transform_indices = @transform_0, window_bounds = array<i64: 1, 4, 16, 16>}, {pipeline_mode = #tpu.pipeline_mode<synchronous>, transform_indices = @transform_1, window_bounds = array<i64: 8, 36>}, {transform_indices = @transform_2, window_bounds = array<i64: 1, 8, 256>}]} {
    %cst = arith.constant 0.000000e+00 : f32
    %0 = vector.broadcast %cst : f32 to vector<4x18x18xf32>
    %c0 = arith.constant 0 : index
    %c0_0 = arith.constant 0 : index
    %c0_1 = arith.constant 0 : index
    %1 = vector.load %arg4[%c0, %c0_0, %c0_1] : memref<4x18x18xf32, #tpu.memory_space<vmem>>, vector<4x18x18xf32>
    tpu.vector_store %arg4[%c0, %c0_0, %c0_1], %0 {strides = array<i32>} : memref<4x18x18xf32, #tpu.memory_space<vmem>>, vector<4x18x18xf32>,
    %c0_2 = arith.constant 0 : index
    %c0_3 = arith.constant 0 : index
    %c0_4 = arith.constant 0 : index
    %c0_5 = arith.constant 0 : index
    %2 = vector.load %arg1[%c0_2, %c0_3, %c0_4, %c0_5] : memref<1x4x16x16xf32, #tpu.memory_space<vmem>>, vector<1x4x16x16xf32>
    %3 = vector.shape_cast %2 : vector<1x4x16x16xf32> to vector<4x16x16xf32>
    %c0_6 = arith.constant 0 : index
    %c1 = arith.constant 1 : index
    %c1_7 = arith.constant 1 : index
    %4 = vector.load %arg4[%c0_6, %c1, %c1_7] : memref<4x18x18xf32, #tpu.memory_space<vmem>>, vector<4x16x16xf32>
    tpu.vector_store %arg4[%c0_6, %c1, %c1_7], %3 {strides = array<i32>} : memref<4x18x18xf32, #tpu.memory_space<vmem>>, vector<4x16x16xf32>,
    %c0_8 = arith.constant 0 : index
    %c0_9 = arith.constant 0 : index
    %c0_10 = arith.constant 0 : index
    %5 = vector.load %arg4[%c0_8, %c0_9, %c0_10] : memref<4x18x18xf32, #tpu.memory_space<vmem>>, vector<4x16x16xf32>
    %c0_11 = arith.constant 0 : index
    %c0_12 = arith.constant 0 : index
    %c1_13 = arith.constant 1 : index
    %6 = vector.load %arg4[%c0_11, %c0_12, %c1_13] : memref<4x18x18xf32, #tpu.memory_space<vmem>>, vector<4x16x16xf32>
    %c0_14 = arith.constant 0 : index
    %c0_15 = arith.constant 0 : index
    %c2 = arith.constant 2 : index
    %7 = vector.load %arg4[%c0_14, %c0_15, %c2] : memref<4x18x18xf32, #tpu.memory_space<vmem>>, vector<4x16x16xf32>
    %c0_16 = arith.constant 0 : index
    %c1_17 = arith.constant 1 : index
    %c0_18 = arith.constant 0 : index
    %8 = vector.load %arg4[%c0_16, %c1_17, %c0_18] : memref<4x18x18xf32, #tpu.memory_space<vmem>>, vector<4x16x16xf32>
    %c0_19 = arith.constant 0 : index
    %c1_20 = arith.constant 1 : index
    %c1_21 = arith.constant 1 : index
    %9 = vector.load %arg4[%c0_19, %c1_20, %c1_21] : memref<4x18x18xf32, #tpu.memory_space<vmem>>, vector<4x16x16xf32>
    %c0_22 = arith.constant 0 : index
    %c1_23 = arith.constant 1 : index
    %c2_24 = arith.constant 2 : index
    %10 = vector.load %arg4[%c0_22, %c1_23, %c2_24] : memref<4x18x18xf32, #tpu.memory_space<vmem>>, vector<4x16x16xf32>
    %c0_25 = arith.constant 0 : index
    %c2_26 = arith.constant 2 : index
    %c0_27 = arith.constant 0 : index
    %11 = vector.load %arg4[%c0_25, %c2_26, %c0_27] : memref<4x18x18xf32, #tpu.memory_space<vmem>>, vector<4x16x16xf32>
    %c0_28 = arith.constant 0 : index
    %c2_29 = arith.constant 2 : index
    %c1_30 = arith.constant 1 : index
    %12 = vector.load %arg4[%c0_28, %c2_29, %c1_30] : memref<4x18x18xf32, #tpu.memory_space<vmem>>, vector<4x16x16xf32>
    %c0_31 = arith.constant 0 : index
    %c2_32 = arith.constant 2 : index
    %c2_33 = arith.constant 2 : index
    %13 = vector.load %arg4[%c0_31, %c2_32, %c2_33] : memref<4x18x18xf32, #tpu.memory_space<vmem>>, vector<4x16x16xf32>
    %14 = tpu.concatenate %5, %6, %7, %8, %9, %10, %11, %12, %13 in 0 : vector<4x16x16xf32>, vector<4x16x16xf32>, vector<4x16x16xf32>, vector<4x16x16xf32>, vector<4x16x16xf32>, vector<4x16x16xf32>, vector<4x16x16xf32>, vector<4x16x16xf32>, vector<4x16x16xf32> -> vector<36x16x16xf32>
    %15 = vector.shape_cast %14 : vector<36x16x16xf32> to vector<36x256xf32>
    %c0_34 = arith.constant 0 : index
    %c0_35 = arith.constant 0 : index
    %16 = vector.load %arg2[%c0_34, %c0_35] : memref<8x36xf32, #tpu.memory_space<vmem>>, vector<8x36xf32>
    %cst_36 = arith.constant dense<0.000000e+00> : vector<8x256xf32>
    %17 = tpu.matmul %16, %15, %cst_36 {dimension_numbers = #tpu.dot_dimension_numbers<[1], [0], [0], [1], [0, 0, 1, 1], [], []>} : vector<8x36xf32>, vector<36x256xf32>, vector<8x256xf32> -> vector<8x256xf32>
    %c0_37 = arith.constant 0 : index
    %c0_38 = arith.constant 0 : index
    %c0_39 = arith.constant 0 : index
    %18 = vector.load %arg3[%c0_37, %c0_38, %c0_39] : memref<1x8x256xf32, #tpu.memory_space<vmem>>, vector<1x8x256xf32>
    %19 = vector.shape_cast %18 : vector<1x8x256xf32> to vector<8x256xf32>
    %20 = vector.shape_cast %17 : vector<8x256xf32> to vector<1x8x256xf32>
    tpu.vector_store %arg3[%c0_37, %c0_38, %c0_39], %20 {strides = array<i32>} : memref<1x8x256xf32, #tpu.memory_space<vmem>>, vector<1x8x256xf32>,
    return
  }
  func.func @transform_0(%arg0: i32) -> (i32, i32, i32, i32) {
    %c0_i32 = arith.constant 0 : i32
    %c0_i32_0 = arith.constant 0 : i32
    %c0_i32_1 = arith.constant 0 : i32
    %c0_i32_2 = arith.constant 0 : i32
    return %arg0, %c0_i32, %c0_i32_0, %c0_i32_1 : i32, i32, i32, i32
  }
  func.func @transform_1(%arg0: i32) -> (i32, i32) {
    %c0_i32 = arith.constant 0 : i32
    %c0_i32_0 = arith.constant 0 : i32
    %c0_i32_1 = arith.constant 0 : i32
    return %c0_i32, %c0_i32_0 : i32, i32
  }
  func.func @transform_2(%arg0: i32) -> (i32, i32, i32) {
    %c0_i32 = arith.constant 0 : i32
    %c0_i32_0 = arith.constant 0 : i32
    %c0_i32_1 = arith.constant 0 : i32
    return %arg0, %c0_i32, %c0_i32_0 : i32, i32, i32
  }
}

</mosaic_0001>

<bundles_post_ra>
// kernel: tpu_custom_call.1
= control target key start
LH: loop header
LB: loop body
LE: loop exit
PB: predicated region body
PF: predicated region fallthrough
CT: control target
= control target key end

     0   :  { %7 = vsyncpa [#allocation4], 0  ;;  %s3722_s0 = inlined_call_operand.hbm [shape: f32[2,4,16,16], index: 0, kind: input, shape index: {}]   ;;  %s3723_s1 = inlined_call_operand.hbm [shape: f32[8,36], index: 1, kind: input, shape index: {}]   ;;  %s3724_s2 = inlined_call_operand.hbm [shape: f32[2,8,256], index: 2, kind: output, shape index: {}]  }
   0x1   :  { %9 = vsyncpa [#allocation4 + $0x1], 0 }
   0x2   :  { %10 = vsyncpa [#allocation7], 0 }
   0x3   :  { %11 = vsyncpa [#allocation5], 0 }
   0x4   :  { %13 = vsyncpa [#allocation5 + $0x1], 0  ;;  %s2463_s9 = smov 0   ;;  %s2465_s10 = smov 0  }
   0x5   :  { %s2467_s11 = smov 0   ;;  %s2469_s12 = smov 0  }
   0x6 LB: > { %s2484_s13 = sadd.s32 4294967295, %s2428_s12   ;;  %s2191_s14 = sadd.s32 4294967294, %s2428_s12   ;;  %s2428_s12 = sphi %s2469_s12, %s3857_s12   ;;  %s2424_s11 = sphi %s2467_s11, %s3856_s11   ;;  %s2420_s10 = sphi %s2465_s10, %s3855_s10   ;;  %s2416_s9 = sphi %s2463_s9, %s3854_s9  }
   0x7   : > { %s2488_s15 = sadd.s32 1, %s2428_s12   ;;  %s26_s16 = sadd.s32 1, %s2424_s11 }
   0x8   : > { %s23_s17 = ssub.s32 %s2428_s12, %s2488_s15  ;;  %p33_p0 = scmp.ne.s32.totalorder %s2424_s11, %s2420_s10 }
   0x9   : > { %p24_p1 = scmp.eq.s32.totalorder %s23_s17, 0  ;;  %p34_p2 = scmp.eq.s32.totalorder %s2428_s12, 0 }
   0xa   : > { %p39_p3 = scmp.ne.s32.totalorder %s2420_s10, %s2416_s9  ;;  %p3725_p4 = scmp.eq.s32.totalorder %s2484_s13, 0 }
   0xb   : > { %s2500_s18 = scalar_select %p24_p1, %s2424_s11, %s26_s16  }
   0xc   : > { %p2502_p5 = por %p34_p2, %p33_p0  ;;  %p2508_p6 = por %p3725_p4, %p39_p3 }
   0xd   : > { %p84_p7 = scmp.eq.s32.totalorder %s2484_s13, 1  ;;  %p90_p8 = scmp.eq.s32.totalorder %s2191_s14, 1 }
   0xe   : > { %s3764_s20 = scalar_select %p2508_p6, 1, 0 }
   0xf   : > { %p2192_p9 = scmp.ge.s32.totalorder %s2428_s12, 1  ;;  %p97_p10 = scmp.lt.s32.totalorder %s2428_s12, 3 }
  0x10   : > { %p2515_p11 = por %p84_p7, %p33_p0  ;;  %p2519_p12 = por %p90_p8, %p39_p3 }
  0x11   : > { %p2523_p13 = pnand %p2192_p9, %p97_p10  ;;  %s2430_s24 = smov [#allocation6]  }
  0x12   : > { %s3765_s21 = scalar_select %p2515_p11, 1, 0 }
  0x13   : > { %s3766_s22 = scalar_select %p2519_p12, 1, 0 }
  0x14   : > { %s3767_s23 = scalar_select %p2523_p13, 1, 0 }
  0x15   : > { %p2220_p2 = pneg %p2523_p13  ;;  %s110_s25 = sshll.u32 %s2430_s24, 4  ;;  %s111_s25 = int_to_ptr.vmem [resolvable:$true] %s110_s25 }
  0x16   : > { %p2233_p4 = scmp.lt.s32.totalorder %s2428_s12, 2  ;;  %p3768_p0 = scmp.eq.s32.totalorder %s2484_s13, 0 }
  0x17   : > { %s121_s27 = sand.u32 1, %s2424_s11   ;;  %s2317_s30 = scalar_lea.vmem %s111_s25, 128 }
  0x18   : > { %p2533_p7 = pnand %p2220_p2, %p3768_p0  ;;  %p2540_p3 = pnand %p2233_p4, %p2502_p5 }
  0x19   : > { %s2195_s29 = sshll.u32 %s121_s27, 6  ;;  %p2318_p9 = scmp.ne.s32.totalorder %s111_s25, %s2317_s30 }
  0x1a   : > { %p2308_p8 = pneg %p2533_p7  ;;  %p2325_p12 = scmp.lt.s32.totalorder %s111_s25, %s111_s25 }
  0x1b   : > { %p2326_p11 = scmp.lt.s32.totalorder %s2317_s30, %s2317_s30 }
  0x1c   : > { %p2320_p10 = pnand %p2318_p9, %p2308_p8 }
  0x1d   : > { %p2327_p2 = por %p2326_p11, %p2325_p12 }
  0x1e   : > { %p2321_p1 = pneg %p2320_p10 }
  0x20   : > { %p2328_p0 = pnand %p2327_p2, %p2321_p1 }
  0x22   : > { %2331 = shalt.err (!%p2328_p0)
}
  0x23   : > { %2223 = dma.hbm_to_vmem [thread:$0]  (!%p2533_p7), %s3723_s1, 128, %s111_s25, [#allocation7]  }
  0x24   : > { %s2210_s5 = sshll.u32 %s2428_s12, 10  ;;  %s125_s6 = scalar_lea.vmem [#allocation3], %s2195_s29 }
  0x25   : > { %s132_s7 = sshll.u32 %s125_s6, 4  ;;  %s2555_s16 = scalar_lea.hbm %s3722_s0, %s2210_s5  ;;  %s2557_s7 = int_to_ptr.vmem [resolvable:$true] %s132_s7 }
  0x26   : > { %s2559_s17 = scalar_lea.sflag [#allocation4], %s121_s27  ;;  %s2332_s19 = scalar_lea.hbm %s2555_s16, 1024 }
  0x27   : > { %p2333_p4 = scmp.ne.s32.totalorder %s2555_s16, %s2332_s19  ;;  %p2334_p5 = pneg %p2540_p3 }
  0x28   : > { %s2337_s26 = scalar_lea.hbm %s3722_s0, 2048  ;;  %p2338_p1 = scmp.lt.s32.totalorder %s2555_s16, %s3722_s0 }
  0x29   : > { %p2335_p11 = pnand %p2334_p5, %p2333_p4  ;;  %p2339_p7 = scmp.lt.s32.totalorder %s2337_s26, %s2332_s19 }
  0x2b   : > { %p2336_p12 = pneg %p2335_p11  ;;  %p2340_p8 = por %p2339_p7, %p2338_p1 }
  0x2d   : > { %p2341_p9 = pnand %p2340_p8, %p2336_p12 }
  0x2f   : > { %2344 = shalt.err (!%p2341_p9)
}
  0x30   : > { %s2345_s27 = scalar_lea.vmem %s2557_s7, 1024  ;;  %s2431_s3 = smov [#allocation3]  }
  0x31   : > { %p2346_p10 = scmp.ne.s32.totalorder %s2557_s7, %s2345_s27  ;;  %s2350_s4 = sshll.u32 %s2431_s3, 4  ;;  %s2351_s4 = int_to_ptr.vmem [resolvable:$false] %s2350_s4 }
  0x32   : > { %s2352_s5 = scalar_lea.vmem %s2351_s4, 2048  ;;  %p2353_p4 = scmp.lt.s32.totalorder %s2557_s7, %s2351_s4 }
  0x33   : > { %p2348_p2 = pnand %p2346_p10, %p2334_p5  ;;  %p2354_p11 = scmp.lt.s32.totalorder %s2352_s5, %s2345_s27 }
  0x35   : > { %p2349_p0 = pneg %p2348_p2  ;;  %p2355_p6 = por %p2354_p11, %p2353_p4 }
  0x37   : > { %p2356_p13 = pnand %p2355_p6, %p2349_p0 }
  0x39   : > { %2359 = shalt.err (!%p2356_p13)
}
  0x3a   : > { %s2432_s6 = smov 128   ;;  %s2433_s8 = smov 8  }
  0x3b   : > { %2227 = dma.hbm_to_vmem [thread:$0]  (!%p2540_p3), %s2555_s16, 1024, %s2557_s7, %s2559_s17, %s2432_s6, %s2432_s6, %s2433_s8  }
  0x3c   : > { %p3771_p5 = scmp.ne.s32.totalorder %s3767_s23, 0 }
  0x3e   : > { %144 = sbr.rel (%p3771_p5) target bundleno = 817 (0x331), region = 28 }
  0x43   : > { %s2583_s14 = sand.u32 1, %s2420_s10   ;;  %p3772_p6 = scmp.ne.s32.totalorder %s3764_s20, 0 }
  0x44   : > { %s2199_s19 = sshll.u32 %s2583_s14, 6  ;;  %s147_s24 = scalar_lea.sflag [#allocation4], %s2583_s14 }
  0x45   : > { %s2587_s25 = scalar_lea.vmem [#allocation3], %s2199_s19 }
  0x46   : > { %2403 = dma.done.wait (%p3772_p6), %s147_s24, 1024  }
  0x47   : > { %2405 = vsyncadd (%p3772_p6), %s147_s24, 4294966272  ;;  %p3773_p13 = scmp.eq.s32.totalorder %s2484_s13, 0 }
  0x49   : > { %2407 = dma.done.wait (%p3773_p13), [#allocation7], 128   ;;  %p3774_p3 = pmov %p3773_p13 }
  0x4a   : > { %vm175_vm0 = vcmask 146432   ;;  %vm178_vm1 = vcmask 140288   ;;  %v3731_v0 = vmov 0.0   ;;  %v194_v1 = vld [vmem:[%s2587_s25 + $0x28] sm:$0xff]  ;;  %s2435_s20 = smov 1   ;;  %v196_v3 = vld [vmem:[%s2587_s25 + $0x38] sm:$0xff]  ;;  %v435_v13 = vlaneseq }
  0x4b   : > { %2409 = vsyncadd (%p3774_p3), [#allocation7], 4294967168  ;;  %184 = vst.msk [vmem:[#allocation2 + $0x38] sm:$0xff] %vm175_vm0, %v3731_v0  ;;  %2087 = vmatprep.mubr.f32.mxu0 %v3731_v0  ;;  %v190_v2 = vld [vmem:[%s2587_s25 + $0x8] sm:$0xff]  ;;  %215 = vrot.lane.b32.xlu1 %v194_v1, %s2435_s20  ;;  %v192_v4 = vld [vmem:[%s2587_s25 + $0x18] sm:$0xff]  ;;  %vm229_vm2 = vcmask 138248  }
  0x4c   : > { %185 = vst.msk [vmem:[#allocation2 + $0x40] sm:$0x3] %vm178_vm1, %v3731_v0  ;;  %179 = vst.msk [vmem:[#allocation2 + $0x10] sm:$0x3] %vm178_vm1, %v3731_v0  ;;  %207 = vrot.lane.b32.xlu0 %v190_v2, %s2435_s20  ;;  %v191_v5 = vld [vmem:[%s2587_s25 + $0x10] sm:$0xff]  ;;  %v189_v6 = vld [vmem:[%s2587_s25] sm:$0xff] }
  0x4d   : > { %176 = vst.msk [vmem:[#allocation2] sm:$0xff] %vm175_vm0, %v3731_v0  ;;  %177 = vst.msk [vmem:[#allocation2 + $0x8] sm:$0xff] %vm175_vm0, %v3731_v0  ;;  %v195_v7 = vld [vmem:[%s2587_s25 + $0x30] sm:$0xff]  ;;  %v193_v8 = vld [vmem:[%s2587_s25 + $0x20] sm:$0xff]  ;;  %v2436_v11 = vmov 1983009808  }
  0x4e   : > { %180 = vst.msk [vmem:[#allocation2 + $0x18] sm:$0xff] %vm175_vm0, %v3731_v0  ;;  %181 = vst.msk [vmem:[#allocation2 + $0x20] sm:$0xff] %vm175_vm0, %v3731_v0  ;;  %v433_v12 = vunpack.c.l.s4 %v2436_v11  ;;  %v2622_v17 = vshrl.u32 %v435_v13, 7  ;;  %s2437_s23 = smov 126   ;;  %s2438_s28 = smov 127   ;;  %vm1934_vm3 = vcmask 130048  }
  0x4f   : > { %182 = vst.msk [vmem:[#allocation2 + $0x28] sm:$0x3] %vm178_vm1, %v3731_v0  ;;  %188 = vst.msk [vmem:[#allocation2 + $0x58] sm:$0x3] %vm178_vm1, %v3731_v0  ;;  %219 = vrot.lane.b32.xlu1 %v196_v3, %s2435_s20  ;;  %s2440_s7 = smov 32   ;;  %s2441_s16 = smov 96  }
  0x50   : > { %183 = vst.msk [vmem:[#allocation2 + $0x30] sm:$0xff] %vm175_vm0, %v3731_v0  ;;  %186 = vst.msk [vmem:[#allocation2 + $0x48] sm:$0xff] %vm175_vm0, %v3731_v0  ;;  %211 = vrot.lane.b32.xlu0 %v192_v4, %s2435_s20  ;;  %v434_v16 = vunpack.c.0.s8 %v433_v12  ;;  %s2442_s17 = smov 16   ;;  %s2443_s26 = smov 64   ;;  %vm1940_vm4 = vcmask 261120   ;;  %vm1946_vm5 = vcmask 392192  }
  0x51   : > { %187 = vst.msk [vmem:[#allocation2 + $0x50] sm:$0xff] %vm175_vm0, %v3731_v0  ;;  %s2444_s29 = smov 48   ;;  %s2445_s30 = smov 80   ;;  %vm1952_vm6 = vcmask 523264   ;;  %vm1958_vm7 = vcmask 654336   ;;  %vm1964_vm8 = vcmask 785408  }
  0x52   : > { %v2645_v28 = vsub.s32 %v434_v16, %v2622_v17  ;;  %s2446_s27 = smov 112   ;;  %vm1970_vm9 = vcmask 916480   ;;  %vm2016_vm10 = vcmask 1043456   ;;  %vm2012_vm11 = vcmask 293888   ;;  %s2201_s3 = sshll.u32 %s2583_s14, 4 }
  0x53   : > { %209 = vrot.lane.b32.xlu1 %v191_v5, %s2435_s20  ;;  %s174_s4 = scalar_lea.vmem [#allocation8], %s2201_s3  ;;  %s2211_s6 = sshll.u32 %s2484_s13, 8 }
  0x54   : > { %205 = vrot.lane.b32.xlu0 %v189_v6, %s2435_s20  ;;  %s2111_s5 = sshll.u32 %s174_s4, 4  ;;  %s2109_s24 = scalar_lea.hbm %s3724_s2, %s2211_s6  ;;  %s3682_s5 = int_to_ptr.vmem [resolvable:$true] %s2111_s5 }
  0x55   : > { %s2097_s25 = scalar_lea.sflag [#allocation5], %s2583_s14  ;;  %p3851_p1 = scmp.ne.s32.totalorder %s3765_s21, 0 }
  0x56   : > { %s2447_s13 = smov [#allocation8]  }
  0x57   : > { %217 = vrot.lane.b32.xlu1 %v195_v7, %s2435_s20 }
  0x58   : > { %213 = vrot.lane.b32.xlu0 %v193_v8, %s2435_s20  ;;  %s2360_s20 = scalar_lea.vmem %s3682_s5, 256 }
  0x59   : > { %p2361_p12 = scmp.ne.s32.totalorder %s3682_s5, %s2360_s20 }
  0x5b   : > { %p2362_p7 = pnand %p2361_p12, %p3851_p1 }
  0x5d   : > { %p2363_p8 = pneg %p2362_p7 }
  0xbd   : > { %v216_v9 = vpop.permute.xlu1 %215 }
  0xbe   : > { %v208_v10 = vpop.permute.xlu0 %207  ;;  %235 = vst.msk [vmem:[#allocation2 + $0x39] sm:$0xff] %vm229_vm2, %v216_v9 }
  0xbf   : > { %231 = vst.msk [vmem:[#allocation2 + $0x9] sm:$0xff] %vm229_vm2, %v208_v10 }
  0xc1   : > { %v220_v14 = vpop.permute.xlu1 %219 }
  0xc2   : > { %v212_v15 = vpop.permute.xlu0 %211  ;;  %237 = vst.msk [vmem:[#allocation2 + $0x51] sm:$0xff] %vm229_vm2, %v220_v14 }
  0xc3   : > { %233 = vst.msk [vmem:[#allocation2 + $0x21] sm:$0xff] %vm229_vm2, %v212_v15 }
  0xc5   : > { %v210_v18 = vpop.permute.xlu1 %209  ;;  %v2626_v21 = vld [vmem:[#allocation2 + $0x3a] sm:$0xff] }
  0xc6   : > { %v206_v19 = vpop.permute.xlu0 %205  ;;  %v2624_v20 = vld [vmem:[#allocation2 + $0xa] sm:$0xff]  ;;  %232 = vst.msk [vmem:[#allocation2 + $0x19] sm:$0xff] %vm229_vm2, %v210_v18  ;;  %v2638_v25 = vld [vmem:[#allocation2 + $0x39] sm:$0xff] }
  0xc7   : > { %v2628_v22 = vld [vmem:[#allocation2 + $0x9] sm:$0xff]  ;;  %230 = vst.msk [vmem:[#allocation2 + $0x1] sm:$0xff] %vm229_vm2, %v206_v19  ;;  %408 = vrot.lane.b32.xlu0 %v2624_v20, %s2437_s23  ;;  %v1450_v23 = vcombine.low %v2624_v20, %v2626_v21  ;;  %v1451_v24 = vcombine.high %v2624_v20, %v2626_v21 }
  0xc8   : > { %v1210_v26 = vcombine.low %v2628_v22, %v2638_v25  ;;  %v1211_v27 = vcombine.high %v2628_v22, %v2638_v25 }
  0xc9   : > { %v218_v29 = vpop.permute.xlu1 %217  ;;  %v2647_v32 = vld [vmem:[#allocation2 + $0x52] sm:$0xff]  ;;  %v2665_v39 = vrot.slane %v1450_v23, %v2645_v28  ;;  %v2668_v40 = vrot.slane %v1451_v24, %v2645_v28 }
  0xca   : > { %v214_v30 = vpop.permute.xlu0 %213  ;;  %v257_v31 = vld [vmem:[#allocation2 + $0x22] sm:$0xff]  ;;  %236 = vst.msk [vmem:[#allocation2 + $0x49] sm:$0xff] %vm229_vm2, %v218_v29  ;;  %v2658_v36 = vld [vmem:[#allocation2 + $0x51] sm:$0xff]  ;;  %v2677_v44 = vrot.slane %v1210_v26, %v2645_v28  ;;  %v2680_v45 = vrot.slane %v1211_v27, %v2645_v28 }
  0xcb   : > { %v2649_v33 = vld [vmem:[#allocation2 + $0x21] sm:$0xff]  ;;  %234 = vst.msk [vmem:[#allocation2 + $0x31] sm:$0xff] %vm229_vm2, %v214_v30  ;;  %412 = vrot.lane.b32.xlu1 %v257_v31, %s2437_s23  ;;  %416 = vrot.lane.b32.xlu0 %v2626_v21, %s2437_s23  ;;  %v1466_v34 = vcombine.low %v257_v31, %v2647_v32  ;;  %v1467_v35 = vcombine.high %v257_v31, %v2647_v32 }
  0xcc   : > { %v1226_v37 = vcombine.low %v2649_v33, %v2658_v36  ;;  %v1227_v38 = vcombine.high %v2649_v33, %v2658_v36  ;;  %3775 = vst [vmem:[#allocation12_spill] sm:$0xff] %v2680_v45 }
  0xcd   : > { %v2671_v41 = vrot.slane %v1466_v34, %v2645_v28  ;;  %v2674_v42 = vrot.slane %v1467_v35, %v2645_v28  ;;  %v256_v55 = vld [vmem:[#allocation2 + $0x1a] sm:$0xff] }
  0xce   : > { %v254_v43 = vld [vmem:[#allocation2 + $0x2] sm:$0xff]  ;;  %v2683_v46 = vrot.slane %v1226_v37, %v2645_v28  ;;  %v2686_v47 = vrot.slane %v1227_v38, %v2645_v28  ;;  %v248_v57 = vld [vmem:[#allocation2 + $0x19] sm:$0xff]  ;;  %v2439_v37 = vmov 1934713408  }
  0xcf   : > { %420 = vrot.lane.b32.xlu1 %v2647_v32, %s2437_s23  ;;  %406 = vrot.lane.b32.xlu0 %v254_v43, %s2437_s23  ;;  %v1514_v48 = vcombine.low %v2665_v39, %v2671_v41  ;;  %v1515_v49 = vcombine.high %v2665_v39, %v2671_v41  ;;  %v246_v56 = vld [vmem:[#allocation2 + $0x1] sm:$0xff]  ;;  %v497_v38 = vunpack.c.l.s4 %v2439_v37 }
  0xd0   : > { %3776 = vst [vmem:[#allocation13_spill] sm:$0xff] %v2686_v47  ;;  %v2799_v30 = vld [vmem:[#allocation2] sm:$0xff] }
  0xd1   : > { %v260_v60 = vld [vmem:[#allocation2 + $0x4a] sm:$0xff]  ;;  %3784 = vst [vmem:[#allocation21_spill] sm:$0xff] %v2799_v30 }
  0xd2   : > { %v258_v59 = vld [vmem:[#allocation2 + $0x32] sm:$0xff]  ;;  %v854_v1 = vcombine.low %v256_v55, %v260_v60  ;;  %v252_v2 = vld [vmem:[#allocation2 + $0x49] sm:$0xff]  ;;  %v855_v3 = vcombine.high %v256_v55, %v260_v60 }
  0xd3   : > { %v250_v61 = vld [vmem:[#allocation2 + $0x31] sm:$0xff]  ;;  %410 = vrot.lane.b32.xlu1 %v256_v55, %s2437_s23  ;;  %414 = vrot.lane.b32.xlu0 %v258_v59, %s2437_s23  ;;  %v838_v62 = vcombine.low %v254_v43, %v258_v59  ;;  %v839_v63 = vcombine.high %v254_v43, %v258_v59  ;;  %v614_v6 = vcombine.low %v248_v57, %v252_v2 }
  0xd4   : > { %v598_v4 = vcombine.low %v246_v56, %v250_v61  ;;  %v599_v5 = vcombine.high %v246_v56, %v250_v61  ;;  %v615_v7 = vcombine.high %v248_v57, %v252_v2  ;;  %v2714_v9 = vrot.slane %v854_v1, %v2645_v28  ;;  %v2791_v27 = vld [vmem:[#allocation2 + $0x38] sm:$0xff]  ;;  %v2797_v29 = vld [vmem:[#allocation2 + $0x50] sm:$0xff] }
  0xd5   : > { %v2710_v8 = vrot.slane %v838_v62, %v2645_v28  ;;  %v2719_v10 = vrot.slane %v839_v63, %v2645_v28  ;;  %v2722_v11 = vrot.slane %v855_v3, %v2645_v28  ;;  %v2728_v13 = vrot.slane %v614_v6, %v2645_v28  ;;  %3783 = vst [vmem:[#allocation20_spill] sm:$0xff] %v2797_v29 }
  0xd6   : > { %v2725_v12 = vrot.slane %v598_v4, %v2645_v28  ;;  %v2734_v14 = vrot.slane %v599_v5, %v2645_v28  ;;  %v2737_v15 = vrot.slane %v615_v7, %v2645_v28 }
  0xd7   : > { %418 = vrot.lane.b32.xlu1 %v260_v60, %s2437_s23  ;;  %384 = vrot.lane.b32.xlu0 %v2624_v20, %s2438_s28  ;;  %3777 = vst [vmem:[#allocation14_spill] sm:$0xff] %v2719_v10  ;;  %3778 = vst [vmem:[#allocation15_spill] sm:$0xff] %v2722_v11  ;;  %v902_v16 = vcombine.low %v2710_v8, %v2714_v9 }
  0xd8   : > { %3779 = vst [vmem:[#allocation16_spill] sm:$0xff] %v2734_v14  ;;  %3780 = vst [vmem:[#allocation17_spill] sm:$0xff] %v2737_v15 }
  0xdb   : > { %388 = vrot.lane.b32.xlu1 %v257_v31, %s2438_s28  ;;  %392 = vrot.lane.b32.xlu0 %v2626_v21, %s2438_s28  ;;  %v2805_v31 = vld [vmem:[#allocation2 + $0x18] sm:$0xff] }
  0xdf   : > { %396 = vrot.lane.b32.xlu1 %v2647_v32, %s2438_s28  ;;  %382 = vrot.lane.b32.xlu0 %v254_v43, %s2438_s28  ;;  %v2807_v32 = vld [vmem:[#allocation2 + $0x30] sm:$0xff] }
  0xe0   : > { %3785 = vst [vmem:[#allocation22_spill] sm:$0xff] %v2807_v32 }
  0xe3   : > { %386 = vrot.lane.b32.xlu1 %v256_v55, %s2438_s28  ;;  %390 = vrot.lane.b32.xlu0 %v258_v59, %s2438_s28 }
  0xe7   : > { %394 = vrot.lane.b32.xlu1 %v260_v60, %s2438_s28  ;;  %328 = vrot.lane.b32.xlu0 %v2628_v22, %s2438_s28 }
  0xeb   : > { %332 = vrot.lane.b32.xlu1 %v2649_v33, %s2438_s28  ;;  %336 = vrot.lane.b32.xlu0 %v2638_v25, %s2438_s28 }
  0xef   : > { %340 = vrot.lane.b32.xlu1 %v2658_v36, %s2438_s28  ;;  %352 = vrot.lane.b32.xlu0 %v2628_v22, %s2437_s23  ;;  %v2784_v22 = vld [vmem:[#allocation2 + $0x8] sm:$0xff] }
  0xf0   : > { %3781 = vst [vmem:[#allocation18_spill] sm:$0xff] %v2784_v22 }
  0xf3   : > { %356 = vrot.lane.b32.xlu1 %v2649_v33, %s2437_s23  ;;  %360 = vrot.lane.b32.xlu0 %v2638_v25, %s2437_s23  ;;  %v2789_v25 = vld [vmem:[#allocation2 + $0x20] sm:$0xff]  ;;  %v2813_v33 = vld [vmem:[#allocation2 + $0x48] sm:$0xff] }
  0xf4   : > { %3782 = vst [vmem:[#allocation19_spill] sm:$0xff] %v2789_v25 }
  0xf7   : > { %364 = vrot.lane.b32.xlu1 %v2658_v36, %s2437_s23  ;;  %326 = vrot.lane.b32.xlu0 %v246_v56, %s2438_s28 }
  0xfb   : > { %330 = vrot.lane.b32.xlu1 %v248_v57, %s2438_s28  ;;  %334 = vrot.lane.b32.xlu0 %v250_v61, %s2438_s28 }
  0xff   : > { %338 = vrot.lane.b32.xlu1 %v252_v2, %s2438_s28  ;;  %350 = vrot.lane.b32.xlu0 %v246_v56, %s2437_s23 }
 0x103   : > { %354 = vrot.lane.b32.xlu1 %v248_v57, %s2437_s23  ;;  %358 = vrot.lane.b32.xlu0 %v250_v61, %s2437_s23  ;;  %v498_v61 = vunpack.c.0.s8 %v497_v38 }
 0x105   : > { %v2838_v5 = vsub.s32 %v498_v61, %v2622_v17 }
 0x107   : > { %362 = vrot.lane.b32.xlu1 %v252_v2, %s2437_s23  ;;  %296 = vrot.lane.b32.xlu0 %v2784_v22, %s2437_s23 }
 0x10b   : > { %300 = vrot.lane.b32.xlu1 %v2789_v25, %s2437_s23  ;;  %304 = vrot.lane.b32.xlu0 %v2791_v27, %s2437_s23 }
 0x10f   : > { %308 = vrot.lane.b32.xlu1 %v2797_v29, %s2437_s23  ;;  %294 = vrot.lane.b32.xlu0 %v2799_v30, %s2437_s23 }
 0x113   : > { %298 = vrot.lane.b32.xlu1 %v2805_v31, %s2437_s23  ;;  %302 = vrot.lane.b32.xlu0 %v2807_v32, %s2437_s23 }
 0x117   : > { %306 = vrot.lane.b32.xlu1 %v2813_v33, %s2437_s23  ;;  %272 = vrot.lane.b32.xlu0 %v2784_v22, %s2438_s28  ;;  %s2364_s23 = sshll.u32 %s2447_s13, 4  ;;  %s2365_s23 = int_to_ptr.vmem [resolvable:$false] %s2364_s23 }
 0x118   : > { %p2367_p9 = scmp.lt.s32.totalorder %s3682_s5, %s2365_s23 }
 0x11b   : > { %276 = vrot.lane.b32.xlu1 %v2789_v25, %s2438_s28  ;;  %280 = vrot.lane.b32.xlu0 %v2791_v27, %s2438_s28 }
 0x11f   : > { %284 = vrot.lane.b32.xlu1 %v2797_v29, %s2438_s28  ;;  %270 = vrot.lane.b32.xlu0 %v2799_v30, %s2438_s28 }
 0x123   : > { %274 = vrot.lane.b32.xlu1 %v2805_v31, %s2438_s28  ;;  %278 = vrot.lane.b32.xlu0 %v2807_v32, %s2438_s28 }
 0x127   : > { %282 = vrot.lane.b32.xlu1 %v2813_v33, %s2438_s28  ;;  %s2366_s28 = scalar_lea.vmem %s2365_s23, 512 }
 0x128   : > { %p2368_p10 = scmp.lt.s32.totalorder %s2366_s28, %s2360_s20 }
 0x12a   : > { %p2369_p2 = por %p2368_p10, %p2367_p9 }
 0x12c   : > { %p2370_p0 = pnand %p2369_p2, %p2363_p8 }
 0x139   : > { %v409_v34 = vpop.permute.xlu0 %408 }
 0x13d   : > { %v413_v35 = vpop.permute.xlu1 %412  ;;  %v417_v36 = vpop.permute.xlu0 %416 }
 0x13e   : > { %v1586_v43 = vcombine.low %v409_v34, %v417_v36  ;;  %v1587_v57 = vcombine.high %v409_v34, %v417_v36 }
 0x140   : > { %v1594_v62 = vrot.slane %v1586_v43, %v2645_v28  ;;  %v1601_v4 = vrot.slane %v1587_v57, %v2645_v28 }
 0x141   : > { %v421_v55 = vpop.permute.xlu1 %420  ;;  %v407_v56 = vpop.permute.xlu0 %406 }
 0x142   : > { %v1602_v59 = vcombine.low %v413_v35, %v421_v55  ;;  %v1603_v60 = vcombine.high %v413_v35, %v421_v55 }
 0x144   : > { %v1610_v63 = vrot.slane %v1602_v59, %v2645_v28  ;;  %v1617_v1 = vrot.slane %v1603_v60, %v2645_v28 }
 0x145   : > { %v411_v2 = vpop.permute.xlu1 %410  ;;  %v415_v3 = vpop.permute.xlu0 %414 }
 0x146   : > { %v1619_v6 = vcombine.high %v1594_v62, %v1610_v63  ;;  %v974_v7 = vcombine.low %v407_v56, %v415_v3  ;;  %v1618_v37 = vcombine.low %v1594_v62, %v1610_v63  ;;  %v1635_v35 = vcombine.high %v1601_v4, %v1617_v1 }
 0x147   : > { %v975_v63 = vcombine.high %v407_v56, %v415_v3 }
 0x148   : > { %v2841_v34 = vrot.slane %v1619_v6, %v2838_v5  ;;  %v982_v55 = vrot.slane %v974_v7, %v2645_v28  ;;  %v2850_v59 = vrot.slane %v1635_v35, %v2838_v5  ;;  %v2853_v60 = vrot.slane %v1618_v37, %v2838_v5 }
 0x149   : > { %v419_v36 = vpop.permute.xlu1 %418  ;;  %v2843_v38 = vpop.permute.xlu0 %384  ;;  %v1634_v7 = vcombine.low %v1601_v4, %v1617_v1  ;;  %v989_v3 = vrot.slane %v975_v63, %v2645_v28 }
 0x14a   : > { %v990_v43 = vcombine.low %v411_v2, %v419_v36  ;;  %1827 = vrot.lane.b32.xlu0 %v2841_v34, %s2440_s7  ;;  %v991_v57 = vcombine.high %v411_v2, %v419_v36  ;;  %3786 = vst [vmem:[#allocation23_spill] sm:$0xff] %v2853_v60  ;;  %v1650_v37 = vcombine.high %v2853_v60, %v3731_v0 }
 0x14c   : > { %v998_v17 = vrot.slane %v990_v43, %v2645_v28  ;;  %v1005_v2 = vrot.slane %v991_v57, %v2645_v28 }
 0x14d   : > { %v2855_v61 = vpop.permute.xlu1 %388  ;;  %v2857_v62 = vpop.permute.xlu0 %392 }
 0x14e   : > { %1907 = vrot.lane.b32.xlu0 %v2850_v59, %s2441_s16  ;;  %v1007_v6 = vcombine.high %v982_v55, %v998_v17  ;;  %v1482_v35 = vcombine.low %v2843_v38, %v2857_v62  ;;  %v1022_v26 = vcombine.low %v989_v3, %v1005_v2  ;;  %v1006_v54 = vcombine.low %v982_v55, %v998_v17 }
 0x14f   : > { %v1023_v23 = vcombine.high %v989_v3, %v1005_v2 }
 0x150   : > { %v2865_v36 = vrot.slane %v1007_v6, %v2838_v5  ;;  %v1490_v4 = vrot.slane %v1482_v35, %v2645_v28  ;;  %v2882_v6 = vrot.slane %v1634_v7, %v2838_v5  ;;  %v2894_v35 = vrot.slane %v1514_v48, %v2838_v5 }
 0x151   : > { %v2869_v43 = vpop.permute.xlu1 %396  ;;  %v2871_v56 = vpop.permute.xlu0 %382  ;;  %v2921_v2 = vrot.slane %v1023_v23, %v2838_v5  ;;  %v2937_v23 = vrot.slane %v902_v16, %v2838_v5  ;;  %v1529_v16 = vrot.slane %v1515_v49, %v2838_v5  ;;  %v3792_v49 = vcombine.high %v2710_v8, %v2714_v9 }
 0x152   : > { %v1498_v1 = vcombine.low %v2855_v61, %v2869_v43  ;;  %1687 = vrot.lane.b32.xlu1 %v2865_v36, %s2440_s7  ;;  %1807 = vrot.lane.b32.xlu0 %v1650_v37, %s2442_s17  ;;  %3787 = vst [vmem:[#allocation24_spill] sm:$0xff] %v2894_v35  ;;  %v2899_v37 = vrot.slane %v1022_v26, %v2838_v5 }
 0x153   : > { %v2915_v26 = vrot.slane %v1006_v54, %v2838_v5  ;;  %3790 = vst [vmem:[#allocation27_spill] sm:$0xff] %v2937_v23  ;;  %v1039_v41 = vcombine.high %v2865_v36, %v3731_v0 }
 0x154   : > { %v1506_v57 = vrot.slane %v1498_v1, %v2645_v28 }
 0x155   : > { %v2884_v58 = vpop.permute.xlu1 %386  ;;  %v2886_v63 = vpop.permute.xlu0 %390  ;;  %3789 = vst [vmem:[#allocation26_spill] sm:$0xff] %v2915_v26  ;;  %v1038_v54 = vcombine.high %v2915_v26, %v3731_v0 }
 0x156   : > { %v1546_v24 = vcombine.low %v1490_v4, %v1506_v57  ;;  %1867 = vrot.lane.b32.xlu1 %v2882_v6, %s2443_s26  ;;  %v870_v7 = vcombine.low %v2871_v56, %v2886_v63  ;;  %v1547_v51 = vcombine.high %v1490_v4, %v1506_v57 }
 0x158   : > { %v2902_v1 = vrot.slane %v1546_v24, %v2838_v5  ;;  %v878_v24 = vrot.slane %v870_v7, %v2645_v28  ;;  %v1561_v3 = vrot.slane %v1547_v51, %v2838_v5 }
 0x159   : > { %v2904_v21 = vpop.permute.xlu1 %394  ;;  %v2906_v53 = vpop.permute.xlu0 %328 }
 0x15a   : > { %3788 = vst [vmem:[#allocation25_spill] sm:$0xff] %v2902_v1  ;;  %v886_v55 = vcombine.low %v2884_v58, %v2904_v21  ;;  %1727 = vrot.lane.b32.xlu1 %v2899_v37, %s2443_s26  ;;  %v1579_v48 = vcombine.high %v2894_v35, %v2902_v1  ;;  %v1581_v8 = vcombine.high %v1529_v16, %v1561_v3 }
 0x15c   : > { %v894_v17 = vrot.slane %v886_v55, %v2645_v28  ;;  %1805 = vrot.lane.b32.xlu0 %v1579_v48, %s2442_s17 }
 0x15d   : > { %v2925_v20 = vpop.permute.xlu1 %332  ;;  %v2927_v52 = vpop.permute.xlu0 %336 }
 0x15e   : > { %v934_v50 = vcombine.low %v878_v24, %v894_v17  ;;  %1767 = vrot.lane.b32.xlu1 %v2921_v2, %s2441_s16  ;;  %v935_v4 = vcombine.high %v878_v24, %v894_v17  ;;  %v1314_v51 = vcombine.low %v2906_v53, %v2927_v52  ;;  %v917_v24 = vrot.slane %v3792_v49, %v2838_v5 }
 0x160   : > { %v2940_v7 = vrot.slane %v934_v50, %v2838_v5  ;;  %v1651_v50 = vcombine.high %v2841_v34, %v3731_v0  ;;  %v949_v34 = vrot.slane %v935_v4, %v2838_v5  ;;  %v1322_v4 = vrot.slane %v1314_v51, %v2645_v28 }
 0x161   : > { %v2942_v55 = vpop.permute.xlu1 %340  ;;  %v2944_v48 = vpop.permute.xlu0 %352 }
 0x162   : > { %3791 = vst [vmem:[#allocation28_spill] sm:$0xff] %v2940_v7  ;;  %1667 = vrot.lane.b32.xlu1 %v1038_v54, %s2442_s17  ;;  %v967_v57 = vcombine.high %v2937_v23, %v2940_v7  ;;  %v1330_v19 = vcombine.low %v2925_v20, %v2942_v55 }
 0x164   : > { %1665 = vrot.lane.b32.xlu0 %v967_v57, %s2442_s17  ;;  %v1580_v57 = vcombine.low %v1529_v16, %v1561_v3  ;;  %v1338_v18 = vrot.slane %v1330_v19, %v2645_v28  ;;  %v871_v16 = vcombine.high %v2871_v56, %v2886_v63  ;;  %v3795_v56 = vmov 0.0  }
 0x165   : > { %v2961_v17 = vpop.permute.xlu1 %356  ;;  %v2963_v54 = vpop.permute.xlu0 %360  ;;  %v1652_v63 = vcombine.high %v2882_v6, %v3795_v56 }
 0x166   : > { %1847 = vrot.lane.b32.xlu1 %v1651_v50, %s2444_s29  ;;  %v1346_v39 = vcombine.low %v2944_v48, %v2963_v54  ;;  %v1378_v60 = vcombine.low %v1322_v4, %v1338_v18  ;;  %v3028_v35 = vrot.slane %v871_v16, %v2645_v28 }
 0x168   : > { %1825 = vrot.lane.b32.xlu0 %v1580_v57, %s2440_s7  ;;  %v968_v57 = vcombine.low %v917_v24, %v949_v34  ;;  %v1354_v36 = vrot.slane %v1346_v39, %v2645_v28  ;;  %v2996_v51 = vrot.slane %v1378_v60, %v2838_v5  ;;  %v887_v39 = vcombine.high %v2884_v58, %v2904_v21 }
 0x169   : > { %v2979_v26 = vpop.permute.xlu1 %364  ;;  %v2981_v50 = vpop.permute.xlu0 %326  ;;  %3796 = vst [vmem:[#allocation31_spill] sm:$0xff] %v3028_v35 }
 0x16a   : > { %v1362_v19 = vcombine.low %v2961_v17, %v2979_v26  ;;  %1707 = vrot.lane.b32.xlu1 %v1039_v41, %s2444_s29  ;;  %3793 = vst [vmem:[#allocation29_spill] sm:$0xff] %v2996_v51  ;;  %v3017_v58 = vrot.slane %v887_v39, %v2645_v28 }
 0x16c   : > { %v1370_v0 = vrot.slane %v1362_v19, %v2645_v28  ;;  %1685 = vrot.lane.b32.xlu0 %v968_v57, %s2440_s7 }
 0x16d   : > { %v2990_v9 = vpop.permute.xlu1 %330  ;;  %v2992_v49 = vpop.permute.xlu0 %334 }
 0x16e   : > { %v1410_v7 = vcombine.low %v1354_v36, %v1370_v0  ;;  %1845 = vrot.lane.b32.xlu1 %v1581_v8, %s2444_s29  ;;  %v1411_v23 = vcombine.high %v1354_v36, %v1370_v0  ;;  %v702_v1 = vcombine.low %v2981_v50, %v2992_v49  ;;  %v1499_v0 = vcombine.high %v2855_v61, %v2869_v43 }
 0x16f   : > { %v950_v36 = vcombine.low %v3028_v35, %v3017_v58 }
 0x170   : > { %v2999_v41 = vrot.slane %v1410_v7, %v2838_v5 }
 0x171   : > { %v3003_v19 = vpop.permute.xlu1 %338  ;;  %v3005_v57 = vpop.permute.xlu0 %350 }
 0x172   : > { %3794 = vst [vmem:[#allocation30_spill] sm:$0xff] %v2999_v41  ;;  %v1443_v3 = vcombine.high %v2996_v51, %v2999_v41  ;;  %v718_v60 = vcombine.low %v2990_v9, %v3003_v19  ;;  %v3048_v41 = vrot.slane %v1411_v23, %v2838_v5  ;;  %v3064_v23 = vrot.slane %v1499_v0, %v2645_v28 }
 0x174   : > { %1803 = vrot.lane.b32.xlu0 %v1443_v3, %s2442_s17  ;;  %v1379_v3 = vcombine.high %v1322_v4, %v1338_v18  ;;  %v3031_v7 = vrot.slane %v718_v60, %v2645_v28  ;;  %v710_v18 = vrot.slane %v702_v1, %v2645_v28  ;;  %v969_v60 = vcombine.high %v917_v24, %v949_v34 }
 0x175   : > { %v3019_v21 = vpop.permute.xlu1 %354  ;;  %v3021_v8 = vpop.permute.xlu0 %358 }
 0x176   : > { %v734_v39 = vcombine.low %v3005_v57, %v3021_v8  ;;  %v766_v61 = vcombine.low %v710_v18, %v3031_v7  ;;  %v3057_v1 = vrot.slane %v1379_v3, %v2838_v5 }
 0x178   : > { %1887 = vrot.lane.b32.xlu0 %v1652_v63, %s2445_s30  ;;  %v1483_v63 = vcombine.high %v2843_v38, %v2857_v62  ;;  %v742_v43 = vrot.slane %v734_v39, %v2645_v28  ;;  %v1444_v38 = vcombine.low %v3057_v1, %v3048_v41  ;;  %v3069_v62 = vrot.slane %v950_v36, %v2838_v5 }
 0x179   : > { %v3040_v6 = vpop.permute.xlu1 %362  ;;  %v3042_v16 = vpop.permute.xlu0 %296  ;;  %v3800_v39 = vcombine.low %v2719_v10, %v2722_v11  ;;  %v767_v10 = vcombine.high %v710_v18, %v3031_v7 }
 0x17a   : > { %3797 = vst [vmem:[#allocation32_spill] sm:$0xff] %v3042_v16  ;;  %v750_v4 = vcombine.low %v3019_v21, %v3040_v6 }
 0x17b   : > { %v3075_v3 = vrot.slane %v3800_v39, %v2838_v5 }
 0x17c   : > { %v758_v51 = vrot.slane %v750_v4, %v2645_v28  ;;  %1705 = vrot.lane.b32.xlu0 %v969_v60, %s2444_s29  ;;  %v3078_v4 = vrot.slane %v1483_v63, %v2645_v28  ;;  %v3084_v60 = vrot.slane %v766_v61, %v2838_v5 }
 0x17d   : > { %v3059_v15 = vpop.permute.xlu1 %300  ;;  %v3061_v24 = vpop.permute.xlu0 %304  ;;  %v970_v61 = vcombine.low %v3075_v3, %v3069_v62 }
 0x17e   : > { %3798 = vst [vmem:[#allocation33_spill] sm:$0xff] %v3059_v15  ;;  %3799 = vst [vmem:[#allocation34_spill] sm:$0xff] %v3061_v24  ;;  %v798_v34 = vcombine.low %v742_v43, %v758_v51  ;;  %v1178_v0 = vcombine.low %v3042_v16, %v3061_v24  ;;  %v1562_v39 = vcombine.low %v3078_v4, %v3064_v23 }
 0x17f   : > { %3801 = vst [vmem:[#allocation35_spill] sm:$0xff] %v3084_v60 }
 0x180   : > { %1823 = vrot.lane.b32.xlu0 %v1444_v38, %s2440_s7  ;;  %v3087_v36 = vrot.slane %v798_v34, %v2838_v5  ;;  %v3102_v38 = vrot.slane %v1178_v0, %v2645_v28  ;;  %v1040_v0 = vcombine.high %v2899_v37, %v3795_v56  ;;  %v3806_v37 = vcombine.low %v2677_v44, %v2683_v46 }
 0x181   : > { %v3089_v14 = vpop.permute.xlu1 %308  ;;  %v3091_v47 = vpop.permute.xlu0 %294 }
 0x182   : > { %3802 = vst [vmem:[#allocation36_spill] sm:$0xff] %v3087_v36  ;;  %3803 = vst [vmem:[#allocation37_spill] sm:$0xff] %v3089_v14  ;;  %v1194_v63 = vcombine.low %v3059_v15, %v3089_v14  ;;  %v831_v45 = vcombine.high %v3084_v60, %v3087_v36  ;;  %v799_v14 = vcombine.high %v742_v43, %v758_v51 }
 0x183   : > { %3804 = vst [vmem:[#allocation38_spill] sm:$0xff] %v3091_v47  ;;  %v3135_v43 = vrot.slane %v3806_v37, %v2838_v5  ;;  %v3157_v36 = vrot.slane %v767_v10, %v2838_v5  ;;  %v1042_v60 = vcombine.low %v2784_v22, %v2791_v27 }
 0x184   : > { %v3105_v34 = vrot.slane %v1194_v63, %v2645_v28  ;;  %1663 = vrot.lane.b32.xlu1 %v831_v45, %s2442_s17  ;;  %1725 = vrot.lane.b32.xlu0 %v970_v61, %s2443_s26  ;;  %v1570_v63 = vrot.slane %v1562_v39, %v2838_v5  ;;  %v3805_v45 = vcombine.low %v2668_v40, %v2674_v42 }
 0x185   : > { %v3109_v16 = vpop.permute.xlu1 %298  ;;  %v3111_v24 = vpop.permute.xlu0 %302  ;;  %3807 = vst [vmem:[#allocation39_spill] sm:$0xff] %v3135_v43 }
 0x186   : > { %v1242_v11 = vcombine.low %v3102_v38, %v3105_v34  ;;  %v1538_v61 = vrot.slane %v3805_v45, %v2838_v5  ;;  %v566_v35 = vcombine.low %v3091_v47, %v3111_v24 }
 0x188   : > { %1747 = vrot.lane.b32.xlu1 %v1040_v0, %s2445_s30  ;;  %v3129_v51 = vrot.slane %v1242_v11, %v2838_v5  ;;  %v1582_v18 = vcombine.low %v1538_v61, %v1570_v63  ;;  %v3146_v11 = vrot.slane %v799_v14, %v2838_v5  ;;  %v3149_v45 = vrot.slane %v566_v35, %v2645_v28 }
 0x189   : > { %v3137_v39 = vpop.permute.xlu1 %306  ;;  %v3139_v15 = vpop.permute.xlu0 %272  ;;  %v1058_v14 = vcombine.low %v2789_v25, %v2797_v29  ;;  %v430_v35 = vcombine.low %v2799_v30, %v2807_v32  ;;  %v1583_v22 = vcombine.high %v1538_v61, %v1570_v63  ;;  %v446_v25 = vcombine.low %v2805_v31, %v2813_v33 }
 0x18a   : > { %v582_v7 = vcombine.low %v3109_v16, %v3137_v39  ;;  %v1307_v0 = vcombine.high %v3129_v51, %v3135_v43  ;;  %v3808_v30 = vcombine.high %v2677_v44, %v2683_v46  ;;  %v3809_v63 = vcombine.low %v2725_v12, %v2728_v13 }
 0x18b   : > { %v3197_v44 = vrot.slane %v1042_v60, %v2645_v28  ;;  %v3200_v46 = vrot.slane %v1058_v14, %v2645_v28  ;;  %v1445_v14 = vcombine.high %v3057_v1, %v3048_v41  ;;  %v3220_v43 = vrot.slane %v446_v25, %v2645_v28 }
 0x18c   : > { %v3152_v37 = vrot.slane %v582_v7, %v2645_v28  ;;  %1865 = vrot.lane.b32.xlu1 %v1582_v18, %s2443_s26  ;;  %1801 = vrot.lane.b32.xlu0 %v1307_v0, %s2442_s17  ;;  %v832_v0 = vcombine.low %v3157_v36, %v3146_v11  ;;  %v3181_v32 = vrot.slane %v3808_v30, %v2838_v5 }
 0x18d   : > { %v3165_v47 = vpop.permute.xlu1 %276  ;;  %v3167_v7 = vpop.permute.xlu0 %280  ;;  %v3194_v61 = vrot.slane %v3809_v63, %v2838_v5  ;;  %v3203_v30 = vrot.slane %v430_v35, %v2645_v28  ;;  %v1243_v63 = vcombine.high %v3102_v38, %v3105_v34  ;;  %v1653_v38 = vcombine.high %v2850_v59, %v3795_v56 }
 0x18e   : > { %v630_v10 = vcombine.low %v3149_v45, %v3152_v37  ;;  %v1074_v29 = vcombine.low %v3139_v15, %v3167_v7  ;;  %v1347_v34 = vcombine.high %v2944_v48, %v2963_v54  ;;  %v719_v25 = vcombine.high %v2990_v9, %v3003_v19 }
 0x18f   : > { %v735_v59 = vcombine.high %v3005_v57, %v3021_v8  ;;  %v1563_v9 = vcombine.high %v3078_v4, %v3064_v23  ;;  %v703_v19 = vcombine.high %v2981_v50, %v2992_v49  ;;  %v1106_v8 = vcombine.low %v3197_v44, %v3200_v46 }
 0x190   : > { %1683 = vrot.lane.b32.xlu1 %v832_v0, %s2440_s7  ;;  %1885 = vrot.lane.b32.xlu0 %v1583_v22, %s2445_s30  ;;  %v3188_v18 = vrot.slane %v630_v10, %v2838_v5  ;;  %v1363_v22 = vcombine.high %v2961_v17, %v2979_v26  ;;  %v1331_v26 = vcombine.high %v2925_v20, %v2942_v55 }
 0x191   : > { %v3207_v10 = vpop.permute.xlu1 %284  ;;  %v3209_v0 = vpop.permute.xlu0 %270  ;;  %v751_v17 = vcombine.high %v3019_v21, %v3040_v6  ;;  %v3231_v41 = vrot.slane %v1074_v29, %v2645_v28  ;;  %v1315_v20 = vcombine.high %v2906_v53, %v2927_v52  ;;  %v971_v52 = vcombine.high %v3075_v3, %v3069_v62 }
 0x192   : > { %v1090_v60 = vcombine.low %v3165_v47, %v3207_v10  ;;  %v695_v35 = vcombine.high %v3188_v18, %v3194_v61  ;;  %v694_v48 = vcombine.low %v3188_v18, %v3194_v61  ;;  %v3251_v54 = vrot.slane %v1363_v22, %v2645_v28 }
 0x193   : > { %v3258_v53 = vrot.slane %v1243_v63, %v2838_v5  ;;  %v3265_v57 = vrot.slane %v751_v17, %v2645_v28  ;;  %v3270_v6 = vrot.slane %v1331_v26, %v2645_v28  ;;  %v3273_v62 = vrot.slane %v1347_v34, %v2645_v28 }
 0x194   : > { %v3234_v1 = vrot.slane %v1090_v60, %v2645_v28  ;;  %1843 = vrot.lane.b32.xlu1 %v1445_v14, %s2444_s29  ;;  %1661 = vrot.lane.b32.xlu0 %v695_v35, %s2442_s17  ;;  %v3280_v50 = vrot.slane %v1315_v20, %v2645_v28  ;;  %v3283_v49 = vrot.slane %v719_v25, %v2645_v28 }
 0x195   : > { %v3244_v55 = vpop.permute.xlu1 %274  ;;  %v3246_v29 = vpop.permute.xlu0 %278  ;;  %v3286_v23 = vrot.slane %v735_v59, %v2645_v28  ;;  %v1426_v63 = vcombine.low %v3273_v62, %v3251_v54  ;;  %v833_v14 = vcombine.high %v3157_v36, %v3146_v11  ;;  %v1308_v35 = vcombine.low %v3258_v53, %v3181_v32 }
 0x196   : > { %v1138_v21 = vcombine.low %v3231_v41, %v3234_v1  ;;  %v462_v3 = vcombine.low %v3209_v0, %v3246_v29  ;;  %v3302_v26 = vrot.slane %v703_v19, %v2645_v28  ;;  %v3308_v34 = vrot.slane %v1106_v8, %v2838_v5 }
 0x197   : > { %v814_v17 = vcombine.low %v3286_v23, %v3265_v57  ;;  %v1394_v20 = vcombine.low %v3280_v50, %v3270_v6  ;;  %v3810_v59 = vcombine.high %v2668_v40, %v2674_v42  ;;  %v631_v19 = vcombine.high %v3149_v45, %v3152_v37 }
 0x198   : > { %1927 = vrot.lane.b32.xlu1 %v1653_v38, %s2446_s27  ;;  %1745 = vrot.lane.b32.xlu0 %v971_v52, %s2445_s30  ;;  %v3291_v22 = vrot.slane %v1138_v21, %v2838_v5  ;;  %v1577_v38 = vrot.slane %v1563_v9, %v2838_v5  ;;  %v3313_v25 = vrot.slane %v462_v3, %v2645_v28 }
 0x199   : > { %v3288_v4 = vpop.permute.xlu1 %282  ;;  %v782_v11 = vcombine.low %v3302_v26, %v3283_v49  ;;  %v1545_v21 = vrot.slane %v3810_v59, %v2838_v5  ;;  %v494_v52 = vcombine.low %v3203_v30, %v3220_v43  ;;  %v1041_v3 = vcombine.high %v2921_v2, %v3795_v56  ;;  %v3811_v2 = vld [vmem:[#allocation31_spill] sm:$0xff] }
 0x19a   : > { %v478_v60 = vcombine.low %v3244_v55, %v3288_v4  ;;  %v1170_v9 = vcombine.low %v3308_v34, %v3291_v22  ;;  %v822_v40 = vrot.slane %v814_v17, %v2838_v5  ;;  %v951_v56 = vcombine.high %v3811_v2, %v3017_v58 }
 0x19b   : > { %v790_v45 = vrot.slane %v782_v11, %v2838_v5  ;;  %v3346_v37 = vrot.slane %v494_v52, %v2838_v5  ;;  %v645_v17 = vrot.slane %v631_v19, %v2838_v5  ;;  %v1171_v58 = vcombine.high %v3308_v34, %v3291_v22  ;;  %v3813_v19 = vld [vmem:[#allocation14_spill] sm:$0xff] }
 0x19c   : > { %v3316_v36 = vrot.slane %v478_v60, %v2645_v28  ;;  %1703 = vrot.lane.b32.xlu1 %v833_v14, %s2444_s29  ;;  %1821 = vrot.lane.b32.xlu0 %v1308_v35, %s2440_s7  ;;  %v1434_v60 = vrot.slane %v1426_v63, %v2838_v5  ;;  %v1584_v14 = vcombine.low %v1545_v21, %v1577_v38 }
 0x19d   : > { %v1402_v35 = vrot.slane %v1394_v20, %v2838_v5  ;;  %v834_v59 = vcombine.low %v790_v45, %v822_v40  ;;  %v3812_v20 = vcombine.high %v2725_v12, %v2728_v13  ;;  %v3816_v13 = vld [vmem:[#allocation37_spill] sm:$0xff] }
 0x19e   : > { %v526_v8 = vcombine.low %v3313_v25, %v3316_v36 }
 0x19f   : > { %v1446_v63 = vcombine.low %v1402_v35, %v1434_v60  ;;  %v677_v11 = vrot.slane %v3812_v20, %v2838_v5  ;;  %v1447_v12 = vcombine.high %v1402_v35, %v1434_v60  ;;  %v1309_v20 = vcombine.high %v3258_v53, %v3181_v32  ;;  %v3818_v60 = vld [vmem:[#allocation34_spill] sm:$0xff]  ;;  %v3819_v35 = vld [vmem:[#allocation32_spill] sm:$0xff] }
 0x1a0   : > { %v3339_v42 = vrot.slane %v526_v8, %v2838_v5  ;;  %1787 = vrot.lane.b32.xlu1 %v1041_v3, %s2446_s27  ;;  %1905 = vrot.lane.b32.xlu0 %v1584_v14, %s2441_s16  ;;  %v965_v3 = vrot.slane %v951_v56, %v2838_v5  ;;  %v3814_v14 = vld [vmem:[#allocation15_spill] sm:$0xff]  ;;  %v3817_v56 = vld [vmem:[#allocation33_spill] sm:$0xff]  ;;  %v1107_v32 = vcombine.high %v3197_v44, %v3200_v46 }
 0x1a1   : > { %v696_v52 = vcombine.low %v645_v17, %v677_v11  ;;  %v3815_v2 = vcombine.high %v3813_v19, %v3814_v14  ;;  %v1139_v19 = vcombine.high %v3231_v41, %v3234_v1  ;;  %v3820_v14 = vld [vmem:[#allocation38_spill] sm:$0xff]  ;;  %v1427_v41 = vcombine.high %v3273_v62, %v3251_v54 }
 0x1a2   : > { %v1395_v44 = vcombine.high %v3280_v50, %v3270_v6  ;;  %v1121_v54 = vrot.slane %v1107_v32, %v2838_v5 }
 0x1a3   : > { %v1153_v53 = vrot.slane %v1139_v19, %v2838_v5 }
 0x1a4   : > { %1863 = vrot.lane.b32.xlu1 %v1446_v63, %s2443_s26  ;;  %1723 = vrot.lane.b32.xlu0 %v834_v59, %s2443_s26  ;;  %v933_v63 = vrot.slane %v3815_v2, %v2838_v5  ;;  %v1195_v59 = vcombine.high %v3817_v56, %v3816_v13  ;;  %v567_v2 = vcombine.high %v3820_v14, %v3111_v24 }
 0x1a5   : > { %v1409_v6 = vrot.slane %v1395_v44, %v2838_v5  ;;  %v527_v13 = vcombine.high %v3313_v25, %v3316_v36  ;;  %v1075_v44 = vcombine.high %v3139_v15, %v3167_v7 }
 0x1a6   : > { %v972_v8 = vcombine.low %v933_v63, %v965_v3  ;;  %v3404_v46 = vrot.slane %v567_v2, %v2645_v28  ;;  %v973_v56 = vcombine.high %v933_v63, %v965_v3  ;;  %v815_v3 = vcombine.high %v3286_v23, %v3265_v57  ;;  %v3828_v57 = vld [vmem:[#allocation20_spill] sm:$0xff]  ;;  %v3829_v23 = vld [vmem:[#allocation19_spill] sm:$0xff] }
 0x1a7   : > { %v541_v63 = vrot.slane %v527_v13, %v2838_v5  ;;  %v1091_v2 = vcombine.high %v3165_v47, %v3207_v10 }
 0x1a8   : > { %1681 = vrot.lane.b32.xlu1 %v696_v52, %s2440_s7  ;;  %1799 = vrot.lane.b32.xlu0 %v1171_v58, %s2442_s17  ;;  %v583_v52 = vcombine.high %v3109_v16, %v3137_v39  ;;  %v559_v58 = vcombine.high %v3346_v37, %v3339_v42  ;;  %v3389_v16 = vrot.slane %v1195_v59, %v2645_v28  ;;  %v3821_v59 = vld [vmem:[#allocation12_spill] sm:$0xff] }
 0x1a9   : > { %v1585_v39 = vcombine.high %v1545_v21, %v1577_v38  ;;  %v697_v38 = vcombine.high %v645_v17, %v677_v11  ;;  %v1441_v21 = vrot.slane %v1427_v41, %v2838_v5  ;;  %v829_v47 = vrot.slane %v815_v3, %v2838_v5 }
 0x1aa   : > { %v3394_v1 = vrot.slane %v583_v52, %v2645_v28 }
 0x1ab   : > { %v1448_v11 = vcombine.low %v1409_v6, %v1441_v21 }
 0x1ac   : > { %1765 = vrot.lane.b32.xlu1 %v972_v8, %s2441_s16  ;;  %1883 = vrot.lane.b32.xlu0 %v1447_v12, %s2445_s30  ;;  %v1179_v8 = vcombine.high %v3819_v35, %v3818_v60  ;;  %v835_v12 = vcombine.high %v790_v45, %v822_v40  ;;  %v646_v40 = vcombine.low %v3404_v46, %v3394_v1  ;;  %v3824_v60 = vld [vmem:[#allocation16_spill] sm:$0xff]  ;;  %v3825_v35 = vld [vmem:[#allocation17_spill] sm:$0xff] }
 0x1ad   : > { %v1172_v45 = vcombine.low %v1121_v54, %v1153_v53  ;;  %v3826_v25 = vcombine.low %v3824_v60, %v3825_v35 }
 0x1ae   : > { %v3398_v24 = vrot.slane %v1179_v8, %v2645_v28  ;;  %v654_v17 = vrot.slane %v646_v40, %v2838_v5  ;;  %v3831_v40 = vld [vmem:[#allocation21_spill] sm:$0xff] }
 0x1af   : > { %v686_v36 = vrot.slane %v3826_v25, %v2838_v5 }
 0x1b0   : > { %1841 = vrot.lane.b32.xlu1 %v1309_v20, %s2444_s29  ;;  %1659 = vrot.lane.b32.xlu0 %v559_v58, %s2442_s17  ;;  %v1258_v62 = vcombine.low %v3398_v24, %v3389_v16  ;;  %v3822_v20 = vld [vmem:[#allocation13_spill] sm:$0xff]  ;;  %v495_v58 = vcombine.high %v3203_v30, %v3220_v43  ;;  %v3827_v43 = vld [vmem:[#allocation18_spill] sm:$0xff] }
 0x1b1   : > { %v3823_v52 = vcombine.low %v3821_v59, %v3822_v20  ;;  %v698_v32 = vcombine.low %v654_v17, %v686_v36  ;;  %v1043_v30 = vcombine.high %v3827_v43, %v2791_v27  ;;  %v3452_v27 = vrot.slane %v1091_v2, %v2645_v28 }
 0x1b2   : > { %v1266_v50 = vrot.slane %v1258_v62, %v2838_v5  ;;  %v509_v41 = vrot.slane %v495_v58, %v2838_v5 }
 0x1b3   : > { %v1298_v19 = vrot.slane %v3823_v52, %v2838_v5  ;;  %v3457_v62 = vrot.slane %v1043_v30, %v2645_v28  ;;  %v1449_v52 = vcombine.high %v1409_v6, %v1441_v21 }
 0x1b4   : > { %1925 = vrot.lane.b32.xlu1 %v1585_v39, %s2446_s27  ;;  %1743 = vrot.lane.b32.xlu0 %v835_v12, %s2445_s30  ;;  %v783_v39 = vcombine.high %v3302_v26, %v3283_v49  ;;  %v1059_v12 = vcombine.high %v3829_v23, %v3828_v57  ;;  %v560_v10 = vcombine.low %v509_v41, %v541_v63 }
 0x1b5   : > { %v1310_v14 = vcombine.low %v1266_v50, %v1298_v19  ;;  %v479_v49 = vcombine.high %v3244_v55, %v3288_v4  ;;  %v1173_v26 = vcombine.high %v1121_v54, %v1153_v53  ;;  %v1089_v55 = vrot.slane %v1075_v44, %v2645_v28 }
 0x1b6   : > { %v797_v15 = vrot.slane %v783_v39, %v2838_v5  ;;  %v1073_v13 = vrot.slane %v1059_v12, %v2645_v28  ;;  %v463_v4 = vcombine.high %v3209_v0, %v3246_v29  ;;  %v1311_v3 = vcombine.high %v1266_v50, %v1298_v19 }
 0x1b7   : > { %v1154_v54 = vcombine.low %v1089_v55, %v3452_v27  ;;  %v561_v19 = vcombine.high %v509_v41, %v541_v63  ;;  %v647_v63 = vcombine.high %v3404_v46, %v3394_v1  ;;  %v3836_v1 = vld [vmem:[#allocation27_spill] sm:$0xff]  ;;  %v3837_v46 = vld [vmem:[#allocation28_spill] sm:$0xff] }
 0x1b8   : > { %1701 = vrot.lane.b32.xlu1 %v697_v38, %s2444_s29  ;;  %1819 = vrot.lane.b32.xlu0 %v1172_v45, %s2440_s7  ;;  %v3830_v38 = vld [vmem:[#allocation22_spill] sm:$0xff]  ;;  %v836_v53 = vcombine.low %v797_v15, %v829_v47  ;;  %v477_v0 = vrot.slane %v463_v4, %v2645_v28  ;;  %v1122_v29 = vcombine.low %v3457_v62, %v1073_v13 }
 0x1b9   : > { %v431_v45 = vcombine.high %v3831_v40, %v3830_v38  ;;  %v1162_v21 = vrot.slane %v1154_v54, %v2838_v5  ;;  %v837_v41 = vcombine.high %v797_v15, %v829_v47  ;;  %v3838_v47 = vcombine.low %v3836_v1, %v3837_v46  ;;  %v3847_v46 = vld [vmem:[#allocation39_spill] sm:$0xff] }
 0x1ba   : > { %v1130_v2 = vrot.slane %v1122_v29, %v2838_v5  ;;  %v1123_v4 = vcombine.high %v3457_v62, %v1073_v13 }
 0x1bc   : > { %1785 = vrot.lane.b32.xlu1 %v973_v56, %s2446_s27  ;;  %1903 = vrot.lane.b32.xlu0 %v1448_v11, %s2441_s16  ;;  %v3435_v8 = vpop.permute.xlu0 %1827  ;;  %v447_v56 = vcombine.high %v2805_v31, %v2813_v33  ;;  %v3474_v11 = vrot.slane %v479_v49, %v2645_v28  ;;  %v3480_v31 = vrot.slane %v431_v45, %v2645_v28 }
 0x1bd   : > { %v1174_v23 = vcombine.low %v1130_v2, %v1162_v21  ;;  %v1155_v45 = vcombine.high %v1089_v55, %v3452_v27  ;;  %v1137_v29 = vrot.slane %v1123_v4, %v2838_v5 }
 0x1be   : > { %v3483_v33 = vrot.slane %v447_v56, %v2645_v28  ;;  %v542_v6 = vcombine.low %v477_v0, %v3474_v11  ;;  %v1175_v56 = vcombine.high %v1130_v2, %v1162_v21 }
 0x1bf   : > { %v1169_v54 = vrot.slane %v1155_v45, %v2838_v5  ;;  %v3846_v45 = vld [vmem:[#allocation23_spill] sm:$0xff] }
 0x1c0   : > { %1861 = vrot.lane.b32.xlu1 %v1310_v14, %s2443_s26  ;;  %1721 = vrot.lane.b32.xlu0 %v698_v32, %s2443_s26  ;;  %v3462_v7 = vpop.permute.xlu0 %1907  ;;  %v699_v14 = vcombine.high %v654_v17, %v686_v36  ;;  %v510_v28 = vcombine.low %v3480_v31, %v3483_v33  ;;  %v1259_v32 = vcombine.high %v3398_v24, %v3389_v16  ;;  %v3832_v17 = vld [vmem:[#allocation24_spill] sm:$0xff]  ;;  %v3833_v36 = vld [vmem:[#allocation25_spill] sm:$0xff] }
 0x1c1   : > { %v550_v30 = vrot.slane %v542_v6, %v2838_v5  ;;  %v3834_v39 = vcombine.low %v3832_v17, %v3833_v36  ;;  %v1176_v13 = vcombine.low %v1137_v29, %v1169_v54  ;;  %v511_v6 = vcombine.high %v3480_v31, %v3483_v33 }
 0x1c2   : > { %v518_v16 = vrot.slane %v510_v28, %v2838_v5  ;;  %v1273_v24 = vrot.slane %v1259_v32, %v2838_v5  ;;  %v1177_v28 = vcombine.high %v1137_v29, %v1169_v54 }
 0x1c4   : > { %1679 = vrot.lane.b32.xlu1 %v560_v10, %s2440_s7  ;;  %1839 = vrot.lane.b32.xlu0 %v1173_v26, %s2444_s29  ;;  %v3476_v58 = vpop.permute.xlu1 %1687  ;;  %v3488_v25 = vpop.permute.xlu0 %1807  ;;  %v562_v12 = vcombine.low %v518_v16, %v550_v30  ;;  %v3835_v10 = vcombine.high %v3821_v59, %v3822_v20  ;;  %v661_v26 = vrot.slane %v647_v63, %v2838_v5  ;;  %v3843_v63 = vld [vmem:[#allocation35_spill] sm:$0xff] }
 0x1c5   : > { %v3839_v59 = vcombine.high %v3824_v60, %v3825_v35  ;;  %v543_v60 = vcombine.high %v477_v0, %v3474_v11  ;;  %v525_v11 = vrot.slane %v511_v6, %v2838_v5  ;;  %v1980_v1 = vsel %vm1934_vm3, %v3846_v45, %v3488_v25 }
 0x1c6   : > { %v1305_v49 = vrot.slane %v3835_v10, %v2838_v5 }
 0x1c7   : > { %v693_v20 = vrot.slane %v3839_v59, %v2838_v5 }
 0x1c8   : > { %1763 = vrot.lane.b32.xlu1 %v836_v53, %s2441_s16  ;;  %1923 = vrot.lane.b32.xlu0 %v1449_v52, %s2446_s27  ;;  %v3499_v43 = vpop.permute.xlu1 %1867  ;;  %v1312_v40 = vcombine.low %v1273_v24, %v1305_v49  ;;  %v563_v52 = vcombine.high %v518_v16, %v550_v30  ;;  %v3841_v30 = vld [vmem:[#allocation30_spill] sm:$0xff] }
 0x1c9   : > { %v700_v55 = vcombine.low %v661_v26, %v693_v20  ;;  %v701_v2 = vcombine.high %v661_v26, %v693_v20 }
 0x1cc   : > { %1881 = vrot.lane.b32.xlu1 %v1311_v3, %s2445_s30  ;;  %1741 = vrot.lane.b32.xlu0 %v699_v14, %s2445_s30  ;;  %v3514_v44 = vpop.permute.xlu1 %1727  ;;  %v1313_v3 = vcombine.high %v1273_v24, %v1305_v49  ;;  %v557_v14 = vrot.slane %v543_v60, %v2838_v5 }
 0x1ce   : > { %v1806_v50 = vpop.permute.xlu0 %1805  ;;  %v565_v36 = vcombine.high %v525_v11, %v557_v14 }
 0x1cf   : > { %v3506_v57 = vsel %vm1934_vm3, %v3834_v39, %v1806_v50  ;;  %v564_v50 = vcombine.low %v525_v11, %v557_v14 }
 0x1d0   : > { %1699 = vrot.lane.b32.xlu1 %v561_v19, %s2444_s29  ;;  %1859 = vrot.lane.b32.xlu0 %v1174_v23, %s2443_s26  ;;  %v3535_v53 = vpop.permute.xlu1 %1767  ;;  %v3840_v19 = vld [vmem:[#allocation29_spill] sm:$0xff] }
 0x1d1   : > { %v3842_v17 = vcombine.low %v3840_v19, %v3841_v30 }
 0x1d4   : > { %1783 = vrot.lane.b32.xlu1 %v837_v41, %s2446_s27  ;;  %1719 = vrot.lane.b32.xlu0 %v562_v12, %s2443_s26  ;;  %v1668_v21 = vpop.permute.xlu1 %1667  ;;  %v3844_v41 = vld [vmem:[#allocation36_spill] sm:$0xff] }
 0x1d5   : > { %v3845_v12 = vcombine.low %v3843_v63, %v3844_v41 }
 0x1d6   : > { %v1666_v38 = vpop.permute.xlu0 %1665 }
 0x1d7   : > { %v1938_v15 = vsel %vm1934_vm3, %v3838_v47, %v1666_v38  ;;  %v3848_v47 = vcombine.low %v3129_v51, %v3847_v46  ;;  %v3849_v51 = vld [vmem:[#allocation26_spill] sm:$0xff] }
 0x1d8   : > { %1901 = vrot.lane.b32.xlu1 %v1312_v40, %s2441_s16  ;;  %1879 = vrot.lane.b32.xlu0 %v1175_v56, %s2445_s30  ;;  %v1848_v0 = vpop.permute.xlu1 %1847  ;;  %v1985_v56 = vsel %vm1940_vm4, %v1980_v1, %v3435_v8 }
 0x1d9   : > { %v1990_v4 = vsel %vm1946_vm5, %v1985_v56, %v1848_v0 }
 0x1da   : > { %v3537_v27 = vpop.permute.xlu0 %1825  ;;  %v1995_v25 = vsel %vm1952_vm6, %v1990_v4, %v3499_v43 }
 0x1db   : > { %v1984_v19 = vsel %vm1940_vm4, %v3506_v57, %v3537_v27 }
 0x1dc   : > { %1761 = vrot.lane.b32.xlu1 %v700_v55, %s2441_s16  ;;  %1739 = vrot.lane.b32.xlu0 %v563_v52, %s2445_s30  ;;  %v1708_v39 = vpop.permute.xlu1 %1707  ;;  %v1939_v52 = vsel %vm1934_vm3, %v3849_v51, %v1668_v21 }
 0x1dd   : > { %v1945_v60 = vsel %vm1940_vm4, %v1939_v52, %v3476_v58 }
 0x1de   : > { %v1686_v35 = vpop.permute.xlu0 %1685 }
 0x1df   : > { %v3545_v62 = vsel %vm1940_vm4, %v1938_v15, %v1686_v35 }
 0x1e0   : > { %1921 = vrot.lane.b32.xlu1 %v1313_v3, %s2446_s27  ;;  %1899 = vrot.lane.b32.xlu0 %v1176_v13, %s2441_s16  ;;  %v1846_v5 = vpop.permute.xlu1 %1845  ;;  %v1951_v13 = vsel %vm1946_vm5, %v1945_v60, %v1708_v39 }
 0x1e1   : > { %v1957_v18 = vsel %vm1952_vm6, %v1951_v13, %v3514_v44 }
 0x1e4   : > { %1781 = vrot.lane.b32.xlu1 %v701_v2, %s2446_s27  ;;  %1919 = vrot.lane.b32.xlu0 %v1177_v28, %s2446_s27 }
 0x1e6   : > { %v1804_v32 = vpop.permute.xlu0 %1803 }
 0x1e7   : > { %v3559_v31 = vsel %vm1934_vm3, %v3842_v17, %v1804_v32  ;;  %v1989_v17 = vsel %vm1946_vm5, %v1984_v19, %v1846_v5 }
 0x1e8   : > { %1759 = vrot.lane.b32.xlu1 %v564_v50, %s2441_s16 }
 0x1ea   : > { %v1888_v33 = vpop.permute.xlu0 %1887 }
 0x1eb   : > { %v2000_v29 = vsel %vm1958_vm7, %v1995_v25, %v1888_v33 }
 0x1ec   : > { %1779 = vrot.lane.b32.xlu1 %v565_v36, %s2446_s27  ;;  %v2005_v3 = vsel %vm1964_vm8, %v2000_v29, %v3462_v7 }
 0x1ee   : > { %v1706_v23 = vpop.permute.xlu0 %1705 }
 0x1ef   : > { %v1950_v57 = vsel %vm1946_vm5, %v3545_v62, %v1706_v23 }
 0x1f2   : > { %v3563_v16 = vpop.permute.xlu0 %1823 }
 0x1f6   : > { %v1664_v24 = vpop.permute.xlu1 %1663  ;;  %v1726_v49 = vpop.permute.xlu0 %1725 }
 0x1f7   : > { %v3569_v10 = vsel %vm1934_vm3, %v3845_v12, %v1664_v24  ;;  %v1956_v5 = vsel %vm1952_vm6, %v1950_v57, %v1726_v49 }
 0x1fa   : > { %v1748_v26 = vpop.permute.xlu1 %1747 }
 0x1fb   : > { %v1963_v6 = vsel %vm1958_vm7, %v1957_v18, %v1748_v26 }
 0x1fc   : > { %v1969_v14 = vsel %vm1964_vm8, %v1963_v6, %v3535_v53 }
 0x1fe   : > { %v1866_v38 = vpop.permute.xlu1 %1865  ;;  %v1802_v40 = vpop.permute.xlu0 %1801 }
 0x1ff   : > { %v3578_v15 = vsel %vm1934_vm3, %v3848_v47, %v1802_v40  ;;  %v1994_v53 = vsel %vm1952_vm6, %v1989_v17, %v1866_v38 }
 0x202   : > { %v3582_v59 = vpop.permute.xlu1 %1683  ;;  %v1886_v20 = vpop.permute.xlu0 %1885 }
 0x203   : > { %v1999_v36 = vsel %vm1958_vm7, %v1994_v53, %v1886_v20  ;;  %v1983_v20 = vsel %vm1940_vm4, %v3559_v31, %v3563_v16  ;;  %v1943_v31 = vsel %vm1940_vm4, %v3569_v10, %v3582_v59 }
 0x206   : > { %v1844_v55 = vpop.permute.xlu1 %1843  ;;  %v1662_v54 = vpop.permute.xlu0 %1661 }
 0x207   : > { %v3594_v8 = vsel %vm1934_vm3, %v694_v48, %v1662_v54  ;;  %v1988_v23 = vsel %vm1946_vm5, %v1983_v20, %v1844_v55 }
 0x20a   : > { %v1928_v43 = vpop.permute.xlu1 %1927  ;;  %v1746_v35 = vpop.permute.xlu0 %1745 }
 0x20b   : > { %v2010_v21 = vsel %vm1970_vm9, %v2005_v3, %v1928_v43  ;;  %v1962_v26 = vsel %vm1958_vm7, %v1956_v5, %v1746_v35 }
 0x20c   : > { %2202 = vmatprep.subr.msk.mxu0 %vm2016_vm10, %v2010_v21 }
 0x20e   : > { %v1704_v61 = vpop.permute.xlu1 %1703  ;;  %v3605_v48 = vpop.permute.xlu0 %1821 }
 0x20f   : > { %v1949_v55 = vsel %vm1946_vm5, %v1943_v31, %v1704_v61  ;;  %v1982_v10 = vsel %vm1940_vm4, %v3578_v15, %v3605_v48 }
 0x212   : > { %v1788_v58 = vpop.permute.xlu1 %1787  ;;  %v1906_v2 = vpop.permute.xlu0 %1905 }
 0x213   : > { %v1975_v7 = vsel %vm1970_vm9, %v1969_v14, %v1788_v58  ;;  %v2004_v39 = vsel %vm1964_vm8, %v1999_v36, %v1906_v2 }
 0x214   : > { %2203 = vmatpush1.msk.msra.mxu0 %vm2016_vm10, %v1975_v7 }
 0x216   : > { %v1864_v28 = vpop.permute.xlu1 %1863  ;;  %v1724_v11 = vpop.permute.xlu0 %1723 }
 0x217   : > { %v1993_v49 = vsel %vm1952_vm6, %v1988_v23, %v1864_v28  ;;  %v1955_v35 = vsel %vm1952_vm6, %v1949_v55, %v1724_v11 }
 0x21a   : > { %v1682_v0 = vpop.permute.xlu1 %1681  ;;  %v1800_v32 = vpop.permute.xlu0 %1799 }
 0x21b   : > { %v1942_v11 = vsel %vm1940_vm4, %v3594_v8, %v1682_v0 }
 0x21e   : > { %v1766_v50 = vpop.permute.xlu1 %1765  ;;  %v1884_v44 = vpop.permute.xlu0 %1883 }
 0x21f   : > { %v1968_v38 = vsel %vm1964_vm8, %v1962_v26, %v1766_v50  ;;  %v1998_v4 = vsel %vm1958_vm7, %v1993_v49, %v1884_v44  ;;  %v1976_v50 = vsel %vm1934_vm3, %v1170_v9, %v1800_v32 }
 0x222   : > { %v1842_v30 = vpop.permute.xlu1 %1841  ;;  %v3616_v33 = vpop.permute.xlu0 %1659 }
 0x223   : > { %v1987_v61 = vsel %vm1946_vm5, %v1982_v10, %v1842_v30 }
 0x226   : > { %v1926_v24 = vpop.permute.xlu1 %1925  ;;  %v1744_v63 = vpop.permute.xlu0 %1743 }
 0x227   : > { %v2009_v41 = vsel %vm1970_vm9, %v2004_v39, %v1926_v24  ;;  %v1961_v3 = vsel %vm1958_vm7, %v1955_v35, %v1744_v63 }
 0x228   : > { %2047 = vmatprep.subr.mxu0 %v2009_v41  ;;  %v3850_v41 = vcombine.low %v3346_v37, %v3339_v42 }
 0x22a   : > { %v1702_v12 = vpop.permute.xlu1 %1701  ;;  %v1820_v27 = vpop.permute.xlu0 %1819 }
 0x22b   : > { %v1948_v15 = vsel %vm1946_vm5, %v1942_v11, %v1702_v12  ;;  %v1981_v48 = vsel %vm1940_vm4, %v1976_v50, %v1820_v27  ;;  %v1935_v12 = vsel %vm1934_vm3, %v3850_v41, %v3616_v33 }
 0x22e   : > { %v1786_v40 = vpop.permute.xlu1 %1785  ;;  %v1904_v45 = vpop.permute.xlu0 %1903 }
 0x22f   : > { %v1974_v1 = vsel %vm1970_vm9, %v1968_v38, %v1786_v40  ;;  %v2003_v54 = vsel %vm1964_vm8, %v1998_v4, %v1904_v45 }
 0x230   : > { %2048 = vmatpush1.msra.mxu0 %v1974_v1  ;;  %v2011_v1 = vld [vmem:[#allocation6] sm:$0xff] }
 0x232   : > { %v1862_v46 = vpop.permute.xlu1 %1861  ;;  %v1722_v47 = vpop.permute.xlu0 %1721 }
 0x233   : > { %v1992_v7 = vsel %vm1952_vm6, %v1987_v61, %v1862_v46  ;;  %v1954_v53 = vsel %vm1952_vm6, %v1948_v15, %v1722_v47 }
 0x236   : > { %v1680_v56 = vpop.permute.xlu1 %1679  ;;  %v1840_v62 = vpop.permute.xlu0 %1839 }
 0x237   : > { %v1986_v36 = vsel %vm1946_vm5, %v1981_v48, %v1840_v62  ;;  %v1941_v57 = vsel %vm1940_vm4, %v1935_v12, %v1680_v56 }
 0x23a   : > { %v1764_v25 = vpop.permute.xlu1 %1763  ;;  %v1924_v51 = vpop.permute.xlu0 %1923 }
 0x23b   : > { %v2008_v52 = vsel %vm1970_vm9, %v2003_v54, %v1924_v51  ;;  %v1967_v13 = vsel %vm1964_vm8, %v1961_v3, %v1764_v25 }
 0x23c   : > { %2049 = vmatprep.subr.mxu0 %v2008_v52 }
 0x23e   : > { %v1882_v29 = vpop.permute.xlu1 %1881  ;;  %v1742_v60 = vpop.permute.xlu0 %1741 }
 0x23f   : > { %v1997_v28 = vsel %vm1958_vm7, %v1992_v7, %v1882_v29  ;;  %v1960_v8 = vsel %vm1958_vm7, %v1954_v53, %v1742_v60 }
 0x242   : > { %v1700_v16 = vpop.permute.xlu1 %1699  ;;  %v1860_v43 = vpop.permute.xlu0 %1859 }
 0x243   : > { %v1991_v22 = vsel %vm1952_vm6, %v1986_v36, %v1860_v43  ;;  %v1947_v5 = vsel %vm1946_vm5, %v1941_v57, %v1700_v16 }
 0x246   : > { %v1784_v21 = vpop.permute.xlu1 %1783  ;;  %v1720_v18 = vpop.permute.xlu0 %1719 }
 0x247   : > { %v1973_v6 = vsel %vm1970_vm9, %v1967_v13, %v1784_v21  ;;  %v1953_v26 = vsel %vm1952_vm6, %v1947_v5, %v1720_v18 }
 0x248   : > { %2050 = vmatpush1.msra.mxu0 %v1973_v6 }
 0x24a   : > { %v1902_v58 = vpop.permute.xlu1 %1901  ;;  %v1880_v14 = vpop.permute.xlu0 %1879 }
 0x24b   : > { %v2002_v44 = vsel %vm1964_vm8, %v1997_v28, %v1902_v58  ;;  %v1996_v34 = vsel %vm1958_vm7, %v1991_v22, %v1880_v14 }
 0x24e   : > { %v1762_v59 = vpop.permute.xlu1 %1761  ;;  %v1740_v2 = vpop.permute.xlu0 %1739 }
 0x24f   : > { %v1966_v9 = vsel %vm1964_vm8, %v1960_v8, %v1762_v59  ;;  %v1959_v38 = vsel %vm1958_vm7, %v1953_v26, %v1740_v2 }
 0x252   : > { %v1922_v19 = vpop.permute.xlu1 %1921  ;;  %v1900_v30 = vpop.permute.xlu0 %1899 }
 0x253   : > { %v2007_v17 = vsel %vm1970_vm9, %v2002_v44, %v1922_v19  ;;  %v2001_v32 = vsel %vm1964_vm8, %v1996_v34, %v1900_v30 }
 0x254   : > { %2051 = vmatprep.subr.mxu0 %v2007_v17 }
 0x256   : > { %v1782_v0 = vpop.permute.xlu1 %1781  ;;  %v1920_v39 = vpop.permute.xlu0 %1919 }
 0x257   : > { %v1972_v24 = vsel %vm1970_vm9, %v1966_v9, %v1782_v0  ;;  %v2006_v63 = vsel %vm1970_vm9, %v2001_v32, %v1920_v39 }
 0x258   : > { %2052 = vmatpush1.msra.mxu0 %v1972_v24 }
 0x259   : > { %2053 = vmatprep.subr.mxu0 %v2006_v63 }
 0x25a   : > { %v1760_v27 = vpop.permute.xlu1 %1759 }
 0x25b   : > { %v1965_v40 = vsel %vm1964_vm8, %v1959_v38, %v1760_v27 }
 0x25e   : > { %v1780_v45 = vpop.permute.xlu1 %1779 }
 0x25f   : > { %v1971_v42 = vsel %vm1970_vm9, %v1965_v40, %v1780_v45 }
 0x260   : > { %2054 = vmatpush1.msra.mxu0 %v1971_v42 }
 0x261   : > { %2204 = vmatmul.mubr.msk.f32.vlgmr.msra.gmra.mxu0 %vm2012_vm11, %v2011_v1 }
 0x321   : > { %v2089_v37 = vpop.f32.mrf.mxu0 }
 0x322   : > { %2094 = vst [vmem:[%s174_s4] sm:$0xff] %v2089_v37 }
 0x323   : > { %v2091_v33 = vpop.f32.mrf.mxu0 }
 0x324   : > { %2095 = vst [vmem:[%s174_s4 + $0x8] sm:$0xff] %v2091_v33 }
 0x325   : > { %2373 = shalt.err (!%p2370_p0)
}
 0x326   : > { %s2374_s7 = scalar_lea.hbm %s2109_s24, 256  ;;  %s2378_s17 = scalar_lea.hbm %s3724_s2, 512 }
 0x327   : > { %p2375_p4 = scmp.ne.s32.totalorder %s2109_s24, %s2374_s7  ;;  %p2379_p6 = scmp.lt.s32.totalorder %s2109_s24, %s3724_s2 }
 0x328   : > { %p2380_p13 = scmp.lt.s32.totalorder %s2378_s17, %s2374_s7 }
 0x329   : > { %p2376_p11 = pnand %p2375_p4, %p3851_p1 }
 0x32a   : > { %p2381_p3 = por %p2380_p13, %p2379_p6 }
 0x32b   : > { %p2377_p5 = pneg %p2376_p11 }
 0x32d   : > { %p2382_p12 = pnand %p2381_p3, %p2377_p5 }
 0x32f   : > { %2385 = shalt.err (!%p2382_p12)
}
 0x330   : > { %2218 = dma.vmem_to_hbm [thread:$0]  (%p3851_p1), %s3682_s5, 256, %s2109_s24, %s2097_s25  }
 0x331 PF: > { %s2123_s30 = sand.u32 1, %s2416_s9   ;;  %p3852_p7 = scmp.ne.s32.totalorder %s3766_s22, 0 }
 0x332   : > { %p3853_p8 = scmp.ge.s32.totalorder %s2428_s12, 2  ;;  %s2124_s27 = scalar_lea.sflag [#allocation5], %s2123_s30 }
 0x334   : > { %p2229_p9 = pnand %p3853_p8, %p3852_p7 }
 0x336   : > { %p2230_p10 = pneg %p2229_p9 }
 0x338   : > { %2411 = dma.done.wait (%p2230_p10), %s2124_s27, 256  }
 0x339   : > { %2413 = vsyncadd (%p2230_p10), %s2124_s27, 4294967040  ;;  %p16_p2 = scmp.ge.s32.totalorder %s2488_s15, 4   ;;  %s3854_s9 = smov %s2420_s10 }
 0x33a   : > { %s3855_s10 = smov %s2424_s11  ;;  %s3856_s11 = smov %s2500_s18 }
 0x33b   : > { %s3857_s12 = smov %s2488_s15  ;;  %18 = sbr.rel (!%p16_p2) target bundleno = 6 (0x6), region = 77 }
 0x340   :  { %2129 = vsyncpa [#allocation4], 1 }
 0x341   :  { %2131 = vsyncpa [#allocation4 + $0x1], 1 }
 0x342   :  { %2132 = vsyncpa [#allocation7], 1 }
 0x343   :  { %2133 = vsyncpa [#allocation5], 1 }
 0x344   :  { %2135 = vsyncpa [#allocation5 + $0x1], 1 }

</bundles_post_ra>
